<compile_context>
chip_gen: v7x
topology: tpu7x:2x2x1
jax: 0.10.0
libtpu: 0.0.40
codegen_flags: <defaults>
</compile_context>

<pallas_src>
import math
from functools import partial

import jax
import jax.numpy as jnp
from jax.experimental import pallas as pl
from jax.experimental.pallas import tpu as pltpu


def mha_kernel(x1_ref, x2_ref, x3_ref,
               wq_ref, bq_ref, wk_ref, bk_ref, wv_ref, bv_ref,
               wd_ref, bd_ref, gamma_ref, beta_ref,
               out_ref, *, bt, seq, num_heads, head_dim, eps):
    D = num_heads * head_dim
    rows = bt * seq

    # Q / K / V projections: bf16 MXU matmuls with f32 accumulation over the whole
    # (rows, D) slab; bias added once.  1/sqrt(head_dim) is pre-folded into wq/bq.
    q = (jnp.dot(x1_ref[...], wq_ref[...], preferred_element_type=jnp.float32)
         + bq_ref[...]).astype(jnp.bfloat16)
    k = (jnp.dot(x2_ref[...], wk_ref[...], preferred_element_type=jnp.float32)
         + bk_ref[...]).astype(jnp.bfloat16)
    v = (jnp.dot(x3_ref[...], wv_ref[...], preferred_element_type=jnp.float32)
         + bv_ref[...]).astype(jnp.bfloat16)

    # Attention: static loop over heads; each head is one rank-3 contraction batched
    # over the bt batch elements in this block (single batch dim, MXU-friendly, no
    # explicit K transpose).
    # TODO(synk): a fully head-batched contraction ('bqhd,bkhd->bhqk') needs
    #   multi-batch-dim dot_general / non-minor transposes in Mosaic; kept per-head
    #   (safe, known-lowering) for now.
    # TODO(synk): for large S, switch to a flash-style KV-block loop (online softmax,
    #   KV block a multiple of 128) so the (S, S) score tile never materializes whole.
    ctx_parts = []
    for h in range(num_heads):
        sl = slice(h * head_dim, (h + 1) * head_dim)
        qh = q[:, sl].reshape(bt, seq, head_dim)
        kh = k[:, sl].reshape(bt, seq, head_dim)
        vh = v[:, sl].reshape(bt, seq, head_dim)
        s = jnp.einsum("bqd,bkd->bqk", qh, kh,
                       preferred_element_type=jnp.float32)
        s = s - jnp.max(s, axis=-1, keepdims=True)
        p = jnp.exp(s)
        # Exact softmax normalization (approx reciprocal was a tolerance cost).
        p = p / jnp.sum(p, axis=-1, keepdims=True)
        # nn.Dropout is identity at inference time.
        # TODO(synk): training-mode dropout (pltpu.prng_* masking) not implemented.
        ctx_h = jnp.einsum("bqk,bkd->bqd", p.astype(jnp.bfloat16), vh,
                           preferred_element_type=jnp.float32)
        ctx_parts.append(ctx_h.reshape(rows, head_dim))
    ctx = jnp.concatenate(ctx_parts, axis=-1).astype(jnp.bfloat16)

    # Output dense projection (bf16 MXU, f32 accumulate), then LayerNorm in f32
    # (torch default eps = 1e-5).
    o = jnp.dot(ctx, wd_ref[...], preferred_element_type=jnp.float32) + bd_ref[...]
    mu = jnp.mean(o, axis=-1, keepdims=True)
    var = jnp.mean(jnp.square(o - mu), axis=-1, keepdims=True)
    xn = (o - mu) * jax.lax.rsqrt(var + eps)

    # One contiguous (rows, D) store (lane-dense, D >= 128).
    out_ref[...] = xn * gamma_ref[...] + beta_ref[...]


def _plan_blocks(B, S, D, bytes_cap=40 * 1024 * 1024):
    """Core- and VMEM-aware choice of the per-grid-step batch block bt.

    Constraints:
      * rows = bt*S must be a multiple of 16 (bf16 sublane tiling) unless bt == B
        (a full-extent block is always legal);
      * prefer grid = B//bt >= 2 so dimension_semantics=('parallel',) can shard the
        grid across v7x's 2 TensorCores (free on v5e/v6e, where the grid is a loop);
      * the per-step VMEM footprint (double-buffered ins/outs, weights, intermediates)
        must fit under a cap that is safe on v7x's 64 MiB VMEM.
    Returns (bt, vmem_limit_bytes).
    """
    def footprint(bt):
        rows = bt * S
        acts = 3 * 2 * rows * D * 2          # x1/x2/x3 blocks, bf16, double-buffered
        wgts = 4 * 2 * D * D * 2             # four (D, D) bf16 weights, double-buffered
        vecs = 6 * 2 * D * 4                 # biases + LN params, f32, double-buffered
        inter = 5 * rows * D * 4             # q, k, v, ctx, o intermediates (upper bound)
        scores = 4 * bt * S * S * 4          # live per-head score/prob tiles
        outs = 2 * rows * D * 4              # output block, f32, double-buffered
        return acts + wgts + vecs + inter + scores + outs

    divisors = [d for d in range(1, B + 1) if B % d == 0]
    valid = [d for d in divisors if (d * S) % 16 == 0 and footprint(d) <= bytes_cap]
    multi = [d for d in valid if B // d >= 2]
    if multi:
        bt = max(multi)                      # biggest block that still fills both TCs
    elif valid:
        bt = max(valid)
    else:
        bt = B                               # full-extent fallback (always legal)
    fp = footprint(bt)
    vmem_limit = int(min(48 * 1024 * 1024, max(32 * 1024 * 1024, fp + fp // 2)))
    return bt, vmem_limit


def multihead_attention1(x1, x2, x3, params, num_heads):
    B, S, D = x1.shape
    head_dim = D // num_heads
    bt, vmem_limit = _plan_blocks(B, S, D)
    rows = bt * S
    grid = B // bt
    scale = 1.0 / math.sqrt(head_dim)

    # Fold the 1/sqrt(head_dim) attention scale into the query projection, and cast
    # activations + matmul weights to bf16 at the pallas_call boundary.  Biases and
    # LayerNorm params stay f32 (added / applied in f32 inside the kernel).
    to_bf16 = lambda a: a.astype(jnp.bfloat16)
    x1f = to_bf16(x1.reshape(B * S, D))
    x2f = to_bf16(x2.reshape(B * S, D))
    x3f = to_bf16(x3.reshape(B * S, D))
    wq = to_bf16(params["wq"] * scale)
    bq = (params["bq"] * scale).astype(jnp.float32)
    wk, wv, wd = map(to_bf16, (params["wk"], params["wv"], params["wd"]))
    bk, bv, bd = params["bk"], params["bv"], params["bd"]
    gamma, beta = params["gamma"], params["beta"]
    # TODO(synk): when x2 is x3 (shared encoder output), fuse the K and V projections
    #   into one (D, 2D) matmul to read the x2 slab once and present a wider N.

    x_spec = pl.BlockSpec((rows, D), lambda b: (b, 0))
    # TODO(synk): for production D (>= 2048) tile the (D, D) weights along the output
    #   columns with an extra 'arbitrary' grid axis, and single-buffer them
    #   (pipeline_mode=pl.Buffered(1)) since their index_map is grid-invariant;
    #   full double-buffered blocks are fine at these shapes.
    w_spec = pl.BlockSpec((D, D), lambda b: (0, 0))
    v_spec = pl.BlockSpec((1, D), lambda b: (0, 0))

    kernel = partial(mha_kernel, bt=bt, seq=S, num_heads=num_heads,
                     head_dim=head_dim, eps=1e-5)

    out_flat = pl.pallas_call(
        kernel,
        out_shape=jax.ShapeDtypeStruct((B * S, D), jnp.float32),
        grid_spec=pltpu.PrefetchScalarGridSpec(
            num_scalar_prefetch=0,
            grid=(grid,),
            in_specs=[x_spec, x_spec, x_spec,
                      w_spec, v_spec,   # query
                      w_spec, v_spec,   # key
                      w_spec, v_spec,   # value
                      w_spec, v_spec,   # dense1
                      v_spec, v_spec],  # layernorm gamma, beta
            out_specs=pl.BlockSpec((rows, D), lambda b: (b, 0)),
        ),
        compiler_params=pltpu.CompilerParams(
            dimension_semantics=("parallel",),   # shards batch blocks across v7x's 2 TCs
            vmem_limit_bytes=vmem_limit,
        ),
    )(x1f, x2f, x3f, wq, bq, wk, bk, wv, bv, wd, bd, gamma, beta)
    return out_flat.reshape(B, S, D)


def reference(x1, x2, x3, params, num_heads):
    """Pure-JAX f32 reference matching the PyTorch forward (eval mode)."""
    B, S, D = x1.shape
    hd = D // num_heads

    def split(x):  # (B,S,D) -> (B,H,S,hd)
        return x.reshape(B, S, num_heads, hd).transpose(0, 2, 1, 3)

    q = split(x1 @ params["wq"] + params["bq"][0])
    k = split(x2 @ params["wk"] + params["bk"][0])
    v = split(x3 @ params["wv"] + params["bv"][0])
    s = jnp.einsum("bhqd,bhkd->bhqk", q, k) / math.sqrt(hd)
    p = jax.nn.softmax(s, axis=-1)
    ctx = jnp.einsum("bhqk,bhkd->bhqd", p, v).transpose(0, 2, 1, 3).reshape(B, S, D)
    o = ctx @ params["wd"] + params["bd"][0]
    mu = o.mean(-1, keepdims=True)
    var = ((o - mu) ** 2).mean(-1, keepdims=True)
    return (o - mu) / jnp.sqrt(var + 1e-5) * params["gamma"][0] + params["beta"][0]


if __name__ == "__main__":
    # batch, seq, hidden (input_dim), heads.  D=128 keeps loads/stores lane-dense;
    # B=4 gives a 2-step grid (both v7x TensorCores busy) with 16-row bf16 blocks.
    B, S, D, H = 4, 8, 128, 4

    key = jax.random.PRNGKey(0)
    keys = jax.random.split(key, 12)
    init = lambda k, shape: (0.02 * jax.random.normal(k, shape)).astype(jnp.float32)

    params = {
        "wq": init(keys[0], (D, D)), "bq": init(keys[1], (1, D)),
        "wk": init(keys[2], (D, D)), "bk": init(keys[3], (1, D)),
        "wv": init(keys[4], (D, D)), "bv": init(keys[5], (1, D)),
        "wd": init(keys[6], (D, D)), "bd": init(keys[7], (1, D)),
        "gamma": jnp.ones((1, D), jnp.float32),
        "beta": jnp.zeros((1, D), jnp.float32),
    }

    x1 = jax.random.normal(keys[8], (B, S, D), jnp.float32)
    x2 = jax.random.normal(keys[9], (B, S, D), jnp.float32)
    x3 = jax.random.normal(keys[10], (B, S, D), jnp.float32)

    out = multihead_attention1(x1, x2, x3, params, num_heads=H)
    out = jax.block_until_ready(out)

    ref = reference(x1, x2, x3, params, num_heads=H)
    assert out.shape == (B, S, D)
    # Tolerance covers bf16 MXU inputs (f32 accumulation); softmax / LayerNorm are f32
    # and the softmax normalization uses an exact reciprocal.
    assert jnp.allclose(out, ref, atol=5e-2, rtol=5e-2), "mismatch vs reference"

    print("KERNEL_OK")
</pallas_src>

<mosaic_0001>
module attributes {stable_mosaic.version = 11 : i64} {
  func.func @mha_kernel(%arg0: i32, %arg1: memref<16x128xbf16, #tpu.memory_space<vmem>>, %arg2: memref<16x128xbf16, #tpu.memory_space<vmem>>, %arg3: memref<16x128xbf16, #tpu.memory_space<vmem>>, %arg4: memref<128x128xbf16, #tpu.memory_space<vmem>>, %arg5: memref<1x128xf32, #tpu.memory_space<vmem>>, %arg6: memref<128x128xbf16, #tpu.memory_space<vmem>>, %arg7: memref<1x128xf32, #tpu.memory_space<vmem>>, %arg8: memref<128x128xbf16, #tpu.memory_space<vmem>>, %arg9: memref<1x128xf32, #tpu.memory_space<vmem>>, %arg10: memref<128x128xbf16, #tpu.memory_space<vmem>>, %arg11: memref<1x128xf32, #tpu.memory_space<vmem>>, %arg12: memref<1x128xf32, #tpu.memory_space<vmem>>, %arg13: memref<1x128xf32, #tpu.memory_space<vmem>>, %arg14: memref<16x128xf32, #tpu.memory_space<vmem>>) attributes {dimension_semantics = [#tpu.dimension_semantics<parallel>], iteration_bounds = array<i64: 2>, scalar_prefetch = 0 : i64, scratch_operands = 0 : i64, tpu.core_type = #tpu.core_type<tc>, window_params = [{transform_indices = @transform_0, window_bounds = array<i64: 16, 128>}, {transform_indices = @transform_1, window_bounds = array<i64: 16, 128>}, {transform_indices = @transform_2, window_bounds = array<i64: 16, 128>}, {pipeline_mode = #tpu.pipeline_mode<synchronous>, transform_indices = @transform_3, window_bounds = array<i64: 128, 128>}, {pipeline_mode = #tpu.pipeline_mode<synchronous>, transform_indices = @transform_4, window_bounds = array<i64: 1, 128>}, {pipeline_mode = #tpu.pipeline_mode<synchronous>, transform_indices = @transform_5, window_bounds = array<i64: 128, 128>}, {pipeline_mode = #tpu.pipeline_mode<synchronous>, transform_indices = @transform_6, window_bounds = array<i64: 1, 128>}, {pipeline_mode = #tpu.pipeline_mode<synchronous>, transform_indices = @transform_7, window_bounds = array<i64: 128, 128>}, {pipeline_mode = #tpu.pipeline_mode<synchronous>, transform_indices = @transform_8, window_bounds = array<i64: 1, 128>}, {pipeline_mode = #tpu.pipeline_mode<synchronous>, transform_indices = @transform_9, window_bounds = array<i64: 128, 128>}, {pipeline_mode = #tpu.pipeline_mode<synchronous>, transform_indices = @transform_10, window_bounds = array<i64: 1, 128>}, {pipeline_mode = #tpu.pipeline_mode<synchronous>, transform_indices = @transform_11, window_bounds = array<i64: 1, 128>}, {pipeline_mode = #tpu.pipeline_mode<synchronous>, transform_indices = @transform_12, window_bounds = array<i64: 1, 128>}, {transform_indices = @transform_13, window_bounds = array<i64: 16, 128>}]} {
    %c0 = arith.constant 0 : index
    %c0_0 = arith.constant 0 : index
    %0 = vector.load %arg1[%c0, %c0_0] : memref<16x128xbf16, #tpu.memory_space<vmem>>, vector<16x128xbf16>
    %c0_1 = arith.constant 0 : index
    %c0_2 = arith.constant 0 : index
    %1 = vector.load %arg4[%c0_1, %c0_2] : memref<128x128xbf16, #tpu.memory_space<vmem>>, vector<128x128xbf16>
    %cst = arith.constant dense<0.000000e+00> : vector<16x128xf32>
    %2 = tpu.matmul %0, %1, %cst {dimension_numbers = #tpu.dot_dimension_numbers<[1], [0], [0], [1], [0, 0, 1, 1], [], []>} : vector<16x128xbf16>, vector<128x128xbf16>, vector<16x128xf32> -> vector<16x128xf32>
    %c0_3 = arith.constant 0 : index
    %c0_4 = arith.constant 0 : index
    %3 = vector.load %arg5[%c0_3, %c0_4] : memref<1x128xf32, #tpu.memory_space<vmem>>, vector<1x128xf32>
    %4 = vector.broadcast %3 : vector<1x128xf32> to vector<16x128xf32>
    %5 = arith.addf %2, %4 : vector<16x128xf32>
    %6 = arith.truncf %5 : vector<16x128xf32> to vector<16x128xbf16>
    %c0_5 = arith.constant 0 : index
    %c0_6 = arith.constant 0 : index
    %7 = vector.load %arg2[%c0_5, %c0_6] : memref<16x128xbf16, #tpu.memory_space<vmem>>, vector<16x128xbf16>
    %c0_7 = arith.constant 0 : index
    %c0_8 = arith.constant 0 : index
    %8 = vector.load %arg6[%c0_7, %c0_8] : memref<128x128xbf16, #tpu.memory_space<vmem>>, vector<128x128xbf16>
    %cst_9 = arith.constant dense<0.000000e+00> : vector<16x128xf32>
    %9 = tpu.matmul %7, %8, %cst_9 {dimension_numbers = #tpu.dot_dimension_numbers<[1], [0], [0], [1], [0, 0, 1, 1], [], []>} : vector<16x128xbf16>, vector<128x128xbf16>, vector<16x128xf32> -> vector<16x128xf32>
    %c0_10 = arith.constant 0 : index
    %c0_11 = arith.constant 0 : index
    %10 = vector.load %arg7[%c0_10, %c0_11] : memref<1x128xf32, #tpu.memory_space<vmem>>, vector<1x128xf32>
    %11 = vector.broadcast %10 : vector<1x128xf32> to vector<16x128xf32>
    %12 = arith.addf %9, %11 : vector<16x128xf32>
    %13 = arith.truncf %12 : vector<16x128xf32> to vector<16x128xbf16>
    %c0_12 = arith.constant 0 : index
    %c0_13 = arith.constant 0 : index
    %14 = vector.load %arg3[%c0_12, %c0_13] : memref<16x128xbf16, #tpu.memory_space<vmem>>, vector<16x128xbf16>
    %c0_14 = arith.constant 0 : index
    %c0_15 = arith.constant 0 : index
    %15 = vector.load %arg8[%c0_14, %c0_15] : memref<128x128xbf16, #tpu.memory_space<vmem>>, vector<128x128xbf16>
    %cst_16 = arith.constant dense<0.000000e+00> : vector<16x128xf32>
    %16 = tpu.matmul %14, %15, %cst_16 {dimension_numbers = #tpu.dot_dimension_numbers<[1], [0], [0], [1], [0, 0, 1, 1], [], []>} : vector<16x128xbf16>, vector<128x128xbf16>, vector<16x128xf32> -> vector<16x128xf32>
    %c0_17 = arith.constant 0 : index
    %c0_18 = arith.constant 0 : index
    %17 = vector.load %arg9[%c0_17, %c0_18] : memref<1x128xf32, #tpu.memory_space<vmem>>, vector<1x128xf32>
    %18 = vector.broadcast %17 : vector<1x128xf32> to vector<16x128xf32>
    %19 = arith.addf %16, %18 : vector<16x128xf32>
    %20 = arith.truncf %19 : vector<16x128xf32> to vector<16x128xbf16>
    %21 = vector.extract_strided_slice %6 {offsets = [0, 0], sizes = [16, 32], strides = [1, 1]} : vector<16x128xbf16> to vector<16x32xbf16>
    %22 = vector.shape_cast %21 : vector<16x32xbf16> to vector<2x8x32xbf16>
    %23 = vector.extract_strided_slice %13 {offsets = [0, 0], sizes = [16, 32], strides = [1, 1]} : vector<16x128xbf16> to vector<16x32xbf16>
    %24 = vector.shape_cast %23 : vector<16x32xbf16> to vector<2x8x32xbf16>
    %25 = vector.extract_strided_slice %20 {offsets = [0, 0], sizes = [16, 32], strides = [1, 1]} : vector<16x128xbf16> to vector<16x32xbf16>
    %26 = vector.shape_cast %25 : vector<16x32xbf16> to vector<2x8x32xbf16>
    "tpu.trace_start"() <{level = 10 : i32, message = "bqd,bkd->bqk"}> : () -> ()
    %cst_19 = arith.constant dense<0.000000e+00> : vector<2x8x8xf32>
    %27 = tpu.matmul %22, %24, %cst_19 {dimension_numbers = #tpu.dot_dimension_numbers<[2], [2], [1], [1], [0, 0, 0, 1, 1, 1], [0], [0]>} : vector<2x8x32xbf16>, vector<2x8x32xbf16>, vector<2x8x8xf32> -> vector<2x8x8xf32>
    "tpu.trace_stop"() : () -> ()
    %cst_20 = arith.constant dense<0xFF800000> : vector<2x8xf32>
    %28 = vector.multi_reduction <maximumf>, %27, %cst_20 [2] : vector<2x8x8xf32> to vector<2x8xf32>
    %29 = vector.shape_cast %28 : vector<2x8xf32> to vector<2x8x1xf32>
    %30 = vector.broadcast %29 : vector<2x8x1xf32> to vector<2x8x8xf32>
    %31 = arith.subf %27, %30 : vector<2x8x8xf32>
    %32 = math.exp %31 : vector<2x8x8xf32>
    %cst_21 = arith.constant dense<0.000000e+00> : vector<2x8xf32>
    %33 = vector.multi_reduction <add>, %32, %cst_21 [2] : vector<2x8x8xf32> to vector<2x8xf32>
    %34 = vector.shape_cast %33 : vector<2x8xf32> to vector<2x8x1xf32>
    %35 = vector.broadcast %34 : vector<2x8x1xf32> to vector<2x8x8xf32>
    %36 = arith.divf %32, %35 : vector<2x8x8xf32>
    %37 = arith.truncf %36 : vector<2x8x8xf32> to vector<2x8x8xbf16>
    "tpu.trace_start"() <{level = 10 : i32, message = "bqk,bkd->bqd"}> : () -> ()
    %cst_22 = arith.constant dense<0.000000e+00> : vector<2x8x32xf32>
    %38 = tpu.matmul %37, %26, %cst_22 {dimension_numbers = #tpu.dot_dimension_numbers<[2], [1], [1], [2], [0, 0, 0, 1, 1, 2], [0], [0]>} : vector<2x8x8xbf16>, vector<2x8x32xbf16>, vector<2x8x32xf32> -> vector<2x8x32xf32>
    "tpu.trace_stop"() : () -> ()
    %39 = vector.shape_cast %38 : vector<2x8x32xf32> to vector<16x32xf32>
    %40 = vector.extract_strided_slice %6 {offsets = [0, 32], sizes = [16, 32], strides = [1, 1]} : vector<16x128xbf16> to vector<16x32xbf16>
    %41 = vector.shape_cast %40 : vector<16x32xbf16> to vector<2x8x32xbf16>
    %42 = vector.extract_strided_slice %13 {offsets = [0, 32], sizes = [16, 32], strides = [1, 1]} : vector<16x128xbf16> to vector<16x32xbf16>
    %43 = vector.shape_cast %42 : vector<16x32xbf16> to vector<2x8x32xbf16>
    %44 = vector.extract_strided_slice %20 {offsets = [0, 32], sizes = [16, 32], strides = [1, 1]} : vector<16x128xbf16> to vector<16x32xbf16>
    %45 = vector.shape_cast %44 : vector<16x32xbf16> to vector<2x8x32xbf16>
    "tpu.trace_start"() <{level = 10 : i32, message = "bqd,bkd->bqk"}> : () -> ()
    %cst_23 = arith.constant dense<0.000000e+00> : vector<2x8x8xf32>
    %46 = tpu.matmul %41, %43, %cst_23 {dimension_numbers = #tpu.dot_dimension_numbers<[2], [2], [1], [1], [0, 0, 0, 1, 1, 1], [0], [0]>} : vector<2x8x32xbf16>, vector<2x8x32xbf16>, vector<2x8x8xf32> -> vector<2x8x8xf32>
    "tpu.trace_stop"() : () -> ()
    %cst_24 = arith.constant dense<0xFF800000> : vector<2x8xf32>
    %47 = vector.multi_reduction <maximumf>, %46, %cst_24 [2] : vector<2x8x8xf32> to vector<2x8xf32>
    %48 = vector.shape_cast %47 : vector<2x8xf32> to vector<2x8x1xf32>
    %49 = vector.broadcast %48 : vector<2x8x1xf32> to vector<2x8x8xf32>
    %50 = arith.subf %46, %49 : vector<2x8x8xf32>
    %51 = math.exp %50 : vector<2x8x8xf32>
    %cst_25 = arith.constant dense<0.000000e+00> : vector<2x8xf32>
    %52 = vector.multi_reduction <add>, %51, %cst_25 [2] : vector<2x8x8xf32> to vector<2x8xf32>
    %53 = vector.shape_cast %52 : vector<2x8xf32> to vector<2x8x1xf32>
    %54 = vector.broadcast %53 : vector<2x8x1xf32> to vector<2x8x8xf32>
    %55 = arith.divf %51, %54 : vector<2x8x8xf32>
    %56 = arith.truncf %55 : vector<2x8x8xf32> to vector<2x8x8xbf16>
    "tpu.trace_start"() <{level = 10 : i32, message = "bqk,bkd->bqd"}> : () -> ()
    %cst_26 = arith.constant dense<0.000000e+00> : vector<2x8x32xf32>
    %57 = tpu.matmul %56, %45, %cst_26 {dimension_numbers = #tpu.dot_dimension_numbers<[2], [1], [1], [2], [0, 0, 0, 1, 1, 2], [0], [0]>} : vector<2x8x8xbf16>, vector<2x8x32xbf16>, vector<2x8x32xf32> -> vector<2x8x32xf32>
    "tpu.trace_stop"() : () -> ()
    %58 = vector.shape_cast %57 : vector<2x8x32xf32> to vector<16x32xf32>
    %59 = vector.extract_strided_slice %6 {offsets = [0, 64], sizes = [16, 32], strides = [1, 1]} : vector<16x128xbf16> to vector<16x32xbf16>
    %60 = vector.shape_cast %59 : vector<16x32xbf16> to vector<2x8x32xbf16>
    %61 = vector.extract_strided_slice %13 {offsets = [0, 64], sizes = [16, 32], strides = [1, 1]} : vector<16x128xbf16> to vector<16x32xbf16>
    %62 = vector.shape_cast %61 : vector<16x32xbf16> to vector<2x8x32xbf16>
    %63 = vector.extract_strided_slice %20 {offsets = [0, 64], sizes = [16, 32], strides = [1, 1]} : vector<16x128xbf16> to vector<16x32xbf16>
    %64 = vector.shape_cast %63 : vector<16x32xbf16> to vector<2x8x32xbf16>
    "tpu.trace_start"() <{level = 10 : i32, message = "bqd,bkd->bqk"}> : () -> ()
    %cst_27 = arith.constant dense<0.000000e+00> : vector<2x8x8xf32>
    %65 = tpu.matmul %60, %62, %cst_27 {dimension_numbers = #tpu.dot_dimension_numbers<[2], [2], [1], [1], [0, 0, 0, 1, 1, 1], [0], [0]>} : vector<2x8x32xbf16>, vector<2x8x32xbf16>, vector<2x8x8xf32> -> vector<2x8x8xf32>
    "tpu.trace_stop"() : () -> ()
    %cst_28 = arith.constant dense<0xFF800000> : vector<2x8xf32>
    %66 = vector.multi_reduction <maximumf>, %65, %cst_28 [2] : vector<2x8x8xf32> to vector<2x8xf32>
    %67 = vector.shape_cast %66 : vector<2x8xf32> to vector<2x8x1xf32>
    %68 = vector.broadcast %67 : vector<2x8x1xf32> to vector<2x8x8xf32>
    %69 = arith.subf %65, %68 : vector<2x8x8xf32>
    %70 = math.exp %69 : vector<2x8x8xf32>
    %cst_29 = arith.constant dense<0.000000e+00> : vector<2x8xf32>
    %71 = vector.multi_reduction <add>, %70, %cst_29 [2] : vector<2x8x8xf32> to vector<2x8xf32>
    %72 = vector.shape_cast %71 : vector<2x8xf32> to vector<2x8x1xf32>
    %73 = vector.broadcast %72 : vector<2x8x1xf32> to vector<2x8x8xf32>
    %74 = arith.divf %70, %73 : vector<2x8x8xf32>
    %75 = arith.truncf %74 : vector<2x8x8xf32> to vector<2x8x8xbf16>
    "tpu.trace_start"() <{level = 10 : i32, message = "bqk,bkd->bqd"}> : () -> ()
    %cst_30 = arith.constant dense<0.000000e+00> : vector<2x8x32xf32>
    %76 = tpu.matmul %75, %64, %cst_30 {dimension_numbers = #tpu.dot_dimension_numbers<[2], [1], [1], [2], [0, 0, 0, 1, 1, 2], [0], [0]>} : vector<2x8x8xbf16>, vector<2x8x32xbf16>, vector<2x8x32xf32> -> vector<2x8x32xf32>
    "tpu.trace_stop"() : () -> ()
    %77 = vector.shape_cast %76 : vector<2x8x32xf32> to vector<16x32xf32>
    %78 = vector.extract_strided_slice %6 {offsets = [0, 96], sizes = [16, 32], strides = [1, 1]} : vector<16x128xbf16> to vector<16x32xbf16>
    %79 = vector.shape_cast %78 : vector<16x32xbf16> to vector<2x8x32xbf16>
    %80 = vector.extract_strided_slice %13 {offsets = [0, 96], sizes = [16, 32], strides = [1, 1]} : vector<16x128xbf16> to vector<16x32xbf16>
    %81 = vector.shape_cast %80 : vector<16x32xbf16> to vector<2x8x32xbf16>
    %82 = vector.extract_strided_slice %20 {offsets = [0, 96], sizes = [16, 32], strides = [1, 1]} : vector<16x128xbf16> to vector<16x32xbf16>
    %83 = vector.shape_cast %82 : vector<16x32xbf16> to vector<2x8x32xbf16>
    "tpu.trace_start"() <{level = 10 : i32, message = "bqd,bkd->bqk"}> : () -> ()
    %cst_31 = arith.constant dense<0.000000e+00> : vector<2x8x8xf32>
    %84 = tpu.matmul %79, %81, %cst_31 {dimension_numbers = #tpu.dot_dimension_numbers<[2], [2], [1], [1], [0, 0, 0, 1, 1, 1], [0], [0]>} : vector<2x8x32xbf16>, vector<2x8x32xbf16>, vector<2x8x8xf32> -> vector<2x8x8xf32>
    "tpu.trace_stop"() : () -> ()
    %cst_32 = arith.constant dense<0xFF800000> : vector<2x8xf32>
    %85 = vector.multi_reduction <maximumf>, %84, %cst_32 [2] : vector<2x8x8xf32> to vector<2x8xf32>
    %86 = vector.shape_cast %85 : vector<2x8xf32> to vector<2x8x1xf32>
    %87 = vector.broadcast %86 : vector<2x8x1xf32> to vector<2x8x8xf32>
    %88 = arith.subf %84, %87 : vector<2x8x8xf32>
    %89 = math.exp %88 : vector<2x8x8xf32>
    %cst_33 = arith.constant dense<0.000000e+00> : vector<2x8xf32>
    %90 = vector.multi_reduction <add>, %89, %cst_33 [2] : vector<2x8x8xf32> to vector<2x8xf32>
    %91 = vector.shape_cast %90 : vector<2x8xf32> to vector<2x8x1xf32>
    %92 = vector.broadcast %91 : vector<2x8x1xf32> to vector<2x8x8xf32>
    %93 = arith.divf %89, %92 : vector<2x8x8xf32>
    %94 = arith.truncf %93 : vector<2x8x8xf32> to vector<2x8x8xbf16>
    "tpu.trace_start"() <{level = 10 : i32, message = "bqk,bkd->bqd"}> : () -> ()
    %cst_34 = arith.constant dense<0.000000e+00> : vector<2x8x32xf32>
    %95 = tpu.matmul %94, %83, %cst_34 {dimension_numbers = #tpu.dot_dimension_numbers<[2], [1], [1], [2], [0, 0, 0, 1, 1, 2], [0], [0]>} : vector<2x8x8xbf16>, vector<2x8x32xbf16>, vector<2x8x32xf32> -> vector<2x8x32xf32>
    "tpu.trace_stop"() : () -> ()
    %96 = vector.shape_cast %95 : vector<2x8x32xf32> to vector<16x32xf32>
    %97 = tpu.concatenate %39, %58, %77, %96 in 1 : vector<16x32xf32>, vector<16x32xf32>, vector<16x32xf32>, vector<16x32xf32> -> vector<16x128xf32>
    %98 = arith.truncf %97 : vector<16x128xf32> to vector<16x128xbf16>
    %c0_35 = arith.constant 0 : index
    %c0_36 = arith.constant 0 : index
    %99 = vector.load %arg10[%c0_35, %c0_36] : memref<128x128xbf16, #tpu.memory_space<vmem>>, vector<128x128xbf16>
    %cst_37 = arith.constant dense<0.000000e+00> : vector<16x128xf32>
    %100 = tpu.matmul %98, %99, %cst_37 {dimension_numbers = #tpu.dot_dimension_numbers<[1], [0], [0], [1], [0, 0, 1, 1], [], []>} : vector<16x128xbf16>, vector<128x128xbf16>, vector<16x128xf32> -> vector<16x128xf32>
    %c0_38 = arith.constant 0 : index
    %c0_39 = arith.constant 0 : index
    %101 = vector.load %arg11[%c0_38, %c0_39] : memref<1x128xf32, #tpu.memory_space<vmem>>, vector<1x128xf32>
    %102 = vector.broadcast %101 : vector<1x128xf32> to vector<16x128xf32>
    %103 = arith.addf %100, %102 : vector<16x128xf32>
    %cst_40 = arith.constant dense<0.000000e+00> : vector<16xf32>
    %104 = vector.multi_reduction <add>, %103, %cst_40 [1] : vector<16x128xf32> to vector<16xf32>
    %105 = vector.shape_cast %104 : vector<16xf32> to vector<16x1xf32>
    %cst_41 = arith.constant 1.280000e+02 : f32
    %106 = vector.broadcast %cst_41 : f32 to vector<16x1xf32>
    %107 = arith.divf %105, %106 : vector<16x1xf32>
    %108 = vector.broadcast %107 : vector<16x1xf32> to vector<16x128xf32>
    %109 = arith.subf %103, %108 : vector<16x128xf32>
    %110 = arith.mulf %109, %109 : vector<16x128xf32>
    %cst_42 = arith.constant dense<0.000000e+00> : vector<16xf32>
    %111 = vector.multi_reduction <add>, %110, %cst_42 [1] : vector<16x128xf32> to vector<16xf32>
    %112 = vector.shape_cast %111 : vector<16xf32> to vector<16x1xf32>
    %cst_43 = arith.constant 1.280000e+02 : f32
    %113 = vector.broadcast %cst_43 : f32 to vector<16x1xf32>
    %114 = arith.divf %112, %113 : vector<16x1xf32>
    %115 = vector.broadcast %107 : vector<16x1xf32> to vector<16x128xf32>
    %116 = arith.subf %103, %115 : vector<16x128xf32>
    %cst_44 = arith.constant 9.99999974E-6 : f32
    %117 = vector.broadcast %cst_44 : f32 to vector<16x1xf32>
    %118 = arith.addf %114, %117 : vector<16x1xf32>
    %119 = math.rsqrt %118 : vector<16x1xf32>
    %120 = vector.broadcast %119 : vector<16x1xf32> to vector<16x128xf32>
    %121 = arith.mulf %116, %120 : vector<16x128xf32>
    %c0_45 = arith.constant 0 : index
    %c0_46 = arith.constant 0 : index
    %122 = vector.load %arg12[%c0_45, %c0_46] : memref<1x128xf32, #tpu.memory_space<vmem>>, vector<1x128xf32>
    %123 = vector.broadcast %122 : vector<1x128xf32> to vector<16x128xf32>
    %124 = arith.mulf %121, %123 : vector<16x128xf32>
    %c0_47 = arith.constant 0 : index
    %c0_48 = arith.constant 0 : index
    %125 = vector.load %arg13[%c0_47, %c0_48] : memref<1x128xf32, #tpu.memory_space<vmem>>, vector<1x128xf32>
    %126 = vector.broadcast %125 : vector<1x128xf32> to vector<16x128xf32>
    %127 = arith.addf %124, %126 : vector<16x128xf32>
    %c0_49 = arith.constant 0 : index
    %c0_50 = arith.constant 0 : index
    %128 = vector.load %arg14[%c0_49, %c0_50] : memref<16x128xf32, #tpu.memory_space<vmem>>, vector<16x128xf32>
    tpu.vector_store %arg14[%c0_49, %c0_50], %127 {strides = array<i32>} : memref<16x128xf32, #tpu.memory_space<vmem>>, vector<16x128xf32>,
    return
  }
  func.func @transform_0(%arg0: i32) -> (i32, i32) {
    %c0_i32 = arith.constant 0 : i32
    %c0_i32_0 = arith.constant 0 : i32
    return %arg0, %c0_i32 : i32, i32
  }
  func.func @transform_1(%arg0: i32) -> (i32, i32) {
    %c0_i32 = arith.constant 0 : i32
    %c0_i32_0 = arith.constant 0 : i32
    return %arg0, %c0_i32 : i32, i32
  }
  func.func @transform_2(%arg0: i32) -> (i32, i32) {
    %c0_i32 = arith.constant 0 : i32
    %c0_i32_0 = arith.constant 0 : i32
    return %arg0, %c0_i32 : i32, i32
  }
  func.func @transform_3(%arg0: i32) -> (i32, i32) {
    %c0_i32 = arith.constant 0 : i32
    %c0_i32_0 = arith.constant 0 : i32
    %c0_i32_1 = arith.constant 0 : i32
    return %c0_i32, %c0_i32_0 : i32, i32
  }
  func.func @transform_4(%arg0: i32) -> (i32, i32) {
    %c0_i32 = arith.constant 0 : i32
    %c0_i32_0 = arith.constant 0 : i32
    %c0_i32_1 = arith.constant 0 : i32
    return %c0_i32, %c0_i32_0 : i32, i32
  }
  func.func @transform_5(%arg0: i32) -> (i32, i32) {
    %c0_i32 = arith.constant 0 : i32
    %c0_i32_0 = arith.constant 0 : i32
    %c0_i32_1 = arith.constant 0 : i32
    return %c0_i32, %c0_i32_0 : i32, i32
  }
  func.func @transform_6(%arg0: i32) -> (i32, i32) {
    %c0_i32 = arith.constant 0 : i32
    %c0_i32_0 = arith.constant 0 : i32
    %c0_i32_1 = arith.constant 0 : i32
    return %c0_i32, %c0_i32_0 : i32, i32
  }
  func.func @transform_7(%arg0: i32) -> (i32, i32) {
    %c0_i32 = arith.constant 0 : i32
    %c0_i32_0 = arith.constant 0 : i32
    %c0_i32_1 = arith.constant 0 : i32
    return %c0_i32, %c0_i32_0 : i32, i32
  }
  func.func @transform_8(%arg0: i32) -> (i32, i32) {
    %c0_i32 = arith.constant 0 : i32
    %c0_i32_0 = arith.constant 0 : i32
    %c0_i32_1 = arith.constant 0 : i32
    return %c0_i32, %c0_i32_0 : i32, i32
  }
  func.func @transform_9(%arg0: i32) -> (i32, i32) {
    %c0_i32 = arith.constant 0 : i32
    %c0_i32_0 = arith.constant 0 : i32
    %c0_i32_1 = arith.constant 0 : i32
    return %c0_i32, %c0_i32_0 : i32, i32
  }
  func.func @transform_10(%arg0: i32) -> (i32, i32) {
    %c0_i32 = arith.constant 0 : i32
    %c0_i32_0 = arith.constant 0 : i32
    %c0_i32_1 = arith.constant 0 : i32
    return %c0_i32, %c0_i32_0 : i32, i32
  }
  func.func @transform_11(%arg0: i32) -> (i32, i32) {
    %c0_i32 = arith.constant 0 : i32
    %c0_i32_0 = arith.constant 0 : i32
    %c0_i32_1 = arith.constant 0 : i32
    return %c0_i32, %c0_i32_0 : i32, i32
  }
  func.func @transform_12(%arg0: i32) -> (i32, i32) {
    %c0_i32 = arith.constant 0 : i32
    %c0_i32_0 = arith.constant 0 : i32
    %c0_i32_1 = arith.constant 0 : i32
    return %c0_i32, %c0_i32_0 : i32, i32
  }
  func.func @transform_13(%arg0: i32) -> (i32, i32) {
    %c0_i32 = arith.constant 0 : i32
    %c0_i32_0 = arith.constant 0 : i32
    return %arg0, %c0_i32 : i32, i32
  }
}

</mosaic_0001>

<bundles_post_ra>
// kernel: tpu_custom_call.1
= control target key start
LH: loop header
LB: loop body
LE: loop exit
PB: predicated region body
PF: predicated region fallthrough
CT: control target
= control target key end

     0   :  { %s3732_s0 = inlined_call_operand.hbm [shape: bf16[32,128], index: 0, kind: input, shape index: {}]   ;;  %s3733_s1 = inlined_call_operand.hbm [shape: bf16[32,128], index: 1, kind: input, shape index: {}]   ;;  %s3734_s2 = inlined_call_operand.hbm [shape: bf16[32,128], index: 2, kind: input, shape index: {}]   ;;  %s3735_s3 = inlined_call_operand.hbm [shape: bf16[128,128], index: 3, kind: input, shape index: {}]   ;;  %s3736_s4 = inlined_call_operand.vmem [shape: f32[1,128], index: 4, kind: input, shape index: {}]   ;;  %s3737_s5 = inlined_call_operand.hbm [shape: bf16[128,128], index: 5, kind: input, shape index: {}]   ;;  %s3738_s6 = inlined_call_operand.vmem [shape: f32[1,128], index: 6, kind: input, shape index: {}]   ;;  %s3739_s7 = inlined_call_operand.hbm [shape: bf16[128,128], index: 7, kind: input, shape index: {}]   ;;  %s3740_s8 = inlined_call_operand.vmem [shape: f32[1,128], index: 8, kind: input, shape index: {}]   ;;  %s3741_s9 = inlined_call_operand.hbm [shape: bf16[128,128], index: 9, kind: input, shape index: {}]   ;;  %s3742_s10 = inlined_call_operand.vmem [shape: f32[1,128], index: 10, kind: input, shape index: {}]   ;;  %s3743_s11 = inlined_call_operand.vmem [shape: f32[1,128], index: 11, kind: input, shape index: {}]   ;;  %s3744_s12 = inlined_call_operand.vmem [shape: f32[1,128], index: 12, kind: input, shape index: {}]   ;;  %s3745_s13 = inlined_call_operand.hbm [shape: f32[32,128], index: 13, kind: output, shape index: {}]  }
   0x1   :  { %3771 = sst [smem:[#allocation26_spill]] %s3733_s1 }
   0x2   :  { %3772 = sst [smem:[#allocation27_spill]] %s3735_s3 }
   0x3   :  { %3773 = sst [smem:[#allocation28_spill]] %s3736_s4 }
   0x4   :  { %3774 = sst [smem:[#allocation29_spill]] %s3739_s7 }
   0x5   :  { %3775 = sst [smem:[#allocation30_spill]] %s3740_s8 }
   0x6   :  { %3776 = sst [smem:[#allocation31_spill]] %s3742_s10 }
   0x7   :  { %3777 = sst [smem:[#allocation32_spill]] %s3743_s11 }
   0x8   :  { %3778 = sst [smem:[#allocation33_spill]] %s3744_s12 }
   0x9   :  { %3779 = sst [smem:[#allocation34_spill]] %s3745_s13 }
   0xa   :  { %18 = vsyncpa [#allocation3], 0 }
   0xb   :  { %20 = vsyncpa [#allocation3 + $0x1], 0 }
   0xc   :  { %21 = vsyncpa [#allocation6], 0 }
   0xd   :  { %23 = vsyncpa [#allocation6 + $0x1], 0 }
   0xe   :  { %24 = vsyncpa [#allocation9], 0 }
   0xf   :  { %25 = vsyncpa [#allocation12], 0 }
  0x10   :  { %26 = vsyncpa [#allocation4], 0 }
  0x11   :  { %28 = vsyncpa [#allocation4 + $0x1], 0  ;;  %s3112_s25 = smov 0   ;;  %s3114_s26 = smov 0  }
  0x12   :  { %s3116_s27 = smov 0   ;;  %s3118_s28 = smov 0  }
  0x13 LB: > { %3780 = sst [smem:[#allocation20_spill]] %s3011_s25  ;;  %s3133_s29 = sadd.s32 4294967295, %s3023_s28   ;;  %s3023_s28 = sphi %s3118_s28, %s3824_s28   ;;  %s3019_s27 = sphi %s3116_s27, %s3828_s27   ;;  %s3015_s26 = sphi %s3114_s26, %s3827_s26   ;;  %s3011_s25 = sphi %s3112_s25, %s3826_s25  }
  0x14   : > { %3781 = sst [smem:[#allocation21_spill]] %s3023_s28  ;;  %s2204_s30 = sadd.s32 4294967294, %s3023_s28  }
  0x15   : > { %p54_p0 = scmp.ne.s32.totalorder %s3015_s26, %s3011_s25  ;;  %p3748_p1 = scmp.eq.s32.totalorder %s3133_s29, 0 }
  0x16   : > { %p346_p3 = scmp.eq.s32.totalorder %s2204_s30, 1  ;;  %p2205_p5 = scmp.ge.s32.totalorder %s3023_s28, 1 }
  0x17   : > { %p3142_p4 = por %p3748_p1, %p54_p0  ;;  %p353_p7 = scmp.lt.s32.totalorder %s3023_s28, 3 }
  0x18   : > { %p3147_p6 = por %p346_p3, %p54_p0  ;;  %s3025_s17 = smov [#allocation8]  }
  0x19   : > { %s3782_s14 = scalar_select %p3142_p4, 1, 0 }
  0x1a   : > { %s3783_s15 = scalar_select %p3147_p6, 1, 0 }
  0x1b   : > { %p3152_p8 = pnand %p2205_p5, %p353_p7  ;;  %s365_s18 = sshll.u32 %s3025_s17, 4  ;;  %s3156_s18 = int_to_ptr.vmem [resolvable:$true] %s365_s18 }
  0x1c   : > { %3784 = sst [smem:[#allocation22_spill]] %s3783_s15  ;;  %s3026_s20 = smov [#allocation11]  }
  0x1d   : > { %s3785_s16 = scalar_select %p3152_p8, 1, 0 }
  0x1e   : > { %p2575_p9 = pneg %p3152_p8  ;;  %s397_s21 = sshll.u32 %s3026_s20, 4  ;;  %s3167_s21 = int_to_ptr.vmem [resolvable:$true] %s397_s21 }
  0x1f   : > { %s3787_s3 = sld [smem:[#allocation27_spill]] }
  0x20   : > { %p3163_p11 = pnand %p2575_p9, %p3748_p1 }
  0x22   : > { %s3786_s19 = scalar_select %p3163_p11, 1, 0 }
  0x23   : > { %p3177_p13 = pneg %p3163_p11 }
  0x25   : > { %s2743_s24 = scalar_lea.hbm %s3787_s3, 1024 }
  0x26   : > { %p2744_p12 = scmp.ne.s32.totalorder %s3787_s3, %s2743_s24  ;;  %p2750_p5 = scmp.lt.u32.totalorder %s2743_s24, %s3787_s3 }
  0x27   : > { %s3788_s15 = scalar_select %p3177_p13, 1, 0 }
  0x28   : > { %p2746_p0 = pnand %p3177_p13, %p2744_p12 }
  0x2a   : > { %p2747_p3 = pneg %p2746_p0 }
  0x2c   : > { %p2752_p7 = pnand %p2750_p5, %p2747_p3 }
  0x2e   : > { %2755 = shalt.err (!%p2752_p7)
}
  0x2f   : > { %s2756_s22 = scalar_lea.vmem %s3156_s18, 1024  ;;  %p2764_p2 = scmp.lt.s32.totalorder %s3156_s18, %s3156_s18 }
  0x30   : > { %p2757_p9 = scmp.ne.s32.totalorder %s3156_s18, %s2756_s22  ;;  %p2765_p6 = scmp.lt.s32.totalorder %s2756_s22, %s2756_s22 }
  0x32   : > { %p2759_p10 = pnand %p2757_p9, %p3177_p13  ;;  %p2766_p12 = por %p2765_p6, %p2764_p2 }
  0x34   : > { %p2760_p1 = pneg %p2759_p10 }
  0x36   : > { %p2767_p0 = pnand %p2766_p12, %p2760_p1 }
  0x38   : > { %2770 = shalt.err (!%p2767_p0)
}
  0x39   : > { %s3751_s23 = smov 64   ;;  %s3753_s25 = smov 4  }
  0x3a   : > { %2578 = dma.hbm_to_vmem [thread:$0]  (!%p3163_p11), %s3787_s3, 1024, %s3156_s18, [#allocation9], %s3751_s23, %s3751_s23, %s3753_s25  }
  0x3b   : > { %s3789_s7 = sld [smem:[#allocation29_spill]] }
  0x41   : > { %s2771_s22 = scalar_lea.hbm %s3789_s7, 1024 }
  0x42   : > { %p2772_p1 = scmp.ne.s32.totalorder %s3789_s7, %s2771_s22  ;;  %p2778_p10 = scmp.lt.u32.totalorder %s2771_s22, %s3789_s7 }
  0x44   : > { %p2774_p2 = pnand %p2772_p1, %p3177_p13 }
  0x46   : > { %p2775_p6 = pneg %p2774_p2 }
  0x48   : > { %p2780_p3 = pnand %p2778_p10, %p2775_p6 }
  0x4a   : > { %2783 = shalt.err (!%p2780_p3)
}
  0x4b   : > { %s2784_s18 = scalar_lea.vmem %s3167_s21, 1024  ;;  %p2792_p12 = scmp.lt.s32.totalorder %s3167_s21, %s3167_s21 }
  0x4c   : > { %p2785_p5 = scmp.ne.s32.totalorder %s3167_s21, %s2784_s18  ;;  %p2793_p0 = scmp.lt.s32.totalorder %s2784_s18, %s2784_s18 }
  0x4e   : > { %p2787_p7 = pnand %p2785_p5, %p3177_p13  ;;  %p2794_p1 = por %p2793_p0, %p2792_p12 }
  0x50   : > { %p2788_p9 = pneg %p2787_p7 }
  0x52   : > { %p2795_p2 = pnand %p2794_p1, %p2788_p9 }
  0x54   : > { %2798 = shalt.err (!%p2795_p2)
}
  0x55   : > { %2584 = dma.hbm_to_vmem [thread:$0]  (!%p3163_p11), %s3789_s7, 1024, %s3167_s21, [#allocation12], %s3751_s23, %s3751_s23, %s3753_s25  }
  0x56   : > { %s3228_s12 = sadd.s32 1, %s3023_s28   ;;  %s41_s13 = sadd.s32 1, %s3019_s27 }
  0x57   : > { %3790 = sst [smem:[#allocation23_spill]] %s3228_s12  ;;  %s38_s24 = ssub.s32 %s3023_s28, %s3228_s12 }
  0x58   : > { %p48_p6 = scmp.ne.s32.totalorder %s3019_s27, %s3015_s26  ;;  %p39_p10 = scmp.eq.s32.totalorder %s38_s24, 0 }
  0x59   : > { %p49_p3 = scmp.eq.s32.totalorder %s3023_s28, 0  ;;  %p3791_p5 = scmp.eq.s32.totalorder %s3133_s29, 1 }
  0x5a   : > { %p2606_p9 = scmp.lt.s32.totalorder %s3023_s28, 2  ;;  %s3750_s20 = sand.u32 1, %s3019_s27  }
  0x5b   : > { %p3238_p7 = por %p3791_p5, %p48_p6  ;;  %p50_p12 = por %p49_p3, %p48_p6 }
  0x5c   : > { %s3244_s17 = scalar_select %p39_p10, %s3019_s27, %s41_s13  }
  0x5d   : > { %s3792_s30 = scalar_select %p3238_p7, 1, 0 }
  0x5e   : > { %3794 = sst [smem:[#allocation25_spill]] %s3244_s17  ;;  %s3249_s21 = sshll.u32 %s3750_s20, 3 }
  0x5f   : > { %3793 = sst [smem:[#allocation24_spill]] %s3792_s30  ;;  %s3252_s22 = sshll.u32 %s3023_s28, 7 }
  0x60   : > { %p3254_p0 = pnand %p2606_p9, %p50_p12  ;;  %s457_s10 = sand.u32 1, %s3023_s28  }
  0x61   : > { %s3796_s1 = sld [smem:[#allocation26_spill]]  ;;  %s461_s20 = scalar_lea.vmem [#allocation5], %s3249_s21 }
  0x62   : > { %s3795_s18 = scalar_select %p3254_p0, 1, 0 }
  0x63   : > { %s468_s23 = sshll.u32 %s461_s20, 4  ;;  %s3029_s25 = smov [#allocation10]   ;;  %s3266_s23 = int_to_ptr.vmem [resolvable:$true] %s468_s23 }
  0x64   : > { %s3268_s3 = sshll.u32 %s3029_s25, 4  ;;  %s3270_s7 = scalar_lea.sflag [#allocation6], %s457_s10  ;;  %s382_s3 = int_to_ptr.vmem [resolvable:$true] %s3268_s3 }
  0x65   : > { %p3276_p2 = pneg %p3254_p0 }
  0x67   : > { %s3263_s13 = scalar_lea.hbm %s3796_s1, %s3252_s22  ;;  %s2804_s12 = scalar_lea.hbm %s3796_s1, 256 }
  0x68   : > { %s2799_s17 = scalar_lea.hbm %s3263_s13, 128  ;;  %p2805_p3 = scmp.lt.u32.totalorder %s3263_s13, %s3796_s1 }
  0x69   : > { %p2800_p1 = scmp.ne.s32.totalorder %s3263_s13, %s2799_s17  ;;  %p2806_p5 = scmp.lt.u32.totalorder %s2804_s12, %s2799_s17 }
  0x6a   : > { %s3797_s11 = scalar_select %p3276_p2, 1, 0 }
  0x6b   : > { %p2802_p6 = pnand %p3276_p2, %p2800_p1  ;;  %p2807_p9 = por %p2806_p5, %p2805_p3 }
  0x6c   : > { %p2808_p12 = scmp.lt.u32.totalorder %s2799_s17, %s3263_s13 }
  0x6d   : > { %p2803_p10 = pneg %p2802_p6 }
  0x6e   : > { %p2809_p7 = por %p2808_p12, %p2807_p9 }
  0x70   : > { %p2810_p4 = pnand %p2809_p7, %p2803_p10 }
  0x72   : > { %2813 = shalt.err (!%p2810_p4)
}
  0x73   : > { %s2814_s10 = scalar_lea.vmem %s3266_s23, 128  ;;  %s3030_s24 = smov [#allocation5]  }
  0x74   : > { %p2815_p1 = scmp.ne.s32.totalorder %s3266_s23, %s2814_s10  ;;  %s2819_s20 = sshll.u32 %s3030_s24, 4  ;;  %s2820_s20 = int_to_ptr.vmem [resolvable:$false] %s2819_s20 }
  0x75   : > { %s2821_s28 = scalar_lea.vmem %s2820_s20, 256  ;;  %p2822_p11 = scmp.lt.s32.totalorder %s3266_s23, %s2820_s20 }
  0x76   : > { %p2817_p6 = pnand %p2815_p1, %p3276_p2  ;;  %p2823_p13 = scmp.lt.s32.totalorder %s2821_s28, %s2814_s10 }
  0x78   : > { %p2818_p8 = pneg %p2817_p6  ;;  %p2824_p3 = por %p2823_p13, %p2822_p11 }
  0x7a   : > { %p2825_p5 = pnand %p2824_p3, %p2818_p8 }
  0x7c   : > { %2828 = shalt.err (!%p2825_p5)
}
  0x7d   : > { %s3798_s12 = smov 4   ;;  %s3799_s17 = smov 64  }
  0x7e   : > { %2594 = dma.hbm_to_vmem [thread:$0]  (!%p3254_p0), %s3263_s13, 128, %s3266_s23, %s3270_s7, %s3799_s17, %s3799_s17, %s3798_s12  }
  0x7f   : > { %s2829_s20 = scalar_lea.hbm %s3737_s5, 1024  ;;  %p3800_p8 = scmp.ne.s32.totalorder %s3788_s15, 0 }
  0x80   : > { %p2830_p4 = scmp.ne.s32.totalorder %s3737_s5, %s2829_s20  ;;  %p2836_p7 = scmp.lt.u32.totalorder %s2829_s20, %s3737_s5 }
  0x82   : > { %p2832_p11 = pnand %p2830_p4, %p3800_p8 }
  0x84   : > { %p2833_p13 = pneg %p2832_p11 }
  0x86   : > { %p2838_p10 = pnand %p2836_p7, %p2833_p13 }
  0x88   : > { %2841 = shalt.err (!%p2838_p10)
}
  0x89   : > { %s2842_s8 = scalar_lea.vmem %s382_s3, 1024  ;;  %p2850_p6 = scmp.lt.s32.totalorder %s382_s3, %s382_s3 }
  0x8a   : > { %p2843_p9 = scmp.ne.s32.totalorder %s382_s3, %s2842_s8  ;;  %p2851_p3 = scmp.lt.s32.totalorder %s2842_s8, %s2842_s8 }
  0x8c   : > { %p2845_p12 = pnand %p2843_p9, %p3800_p8  ;;  %p2852_p5 = por %p2851_p3, %p2850_p6 }
  0x8e   : > { %p2846_p1 = pneg %p2845_p12 }
  0x90   : > { %p2853_p0 = pnand %p2852_p5, %p2846_p1 }
  0x92   : > { %2856 = shalt.err (!%p2853_p0)
}
  0x93   : > { %p3801_p4 = scmp.ne.s32.totalorder %s3786_s19, 0  ;;  %s3031_s30 = smov [#allocation13]  }
  0x94   : > { %s413_s13 = sshll.u32 %s3031_s30, 4  ;;  %s2857_s8 = scalar_lea.hbm %s3741_s9, 1024  ;;  %s414_s13 = int_to_ptr.vmem [resolvable:$true] %s413_s13 }
  0x95   : > { %2581 = dma.hbm_to_vmem [thread:$0]  (!%p3801_p4), %s3737_s5, 1024, %s382_s3, [#allocation9], %s3799_s17, %s3799_s17, %s3798_s12  }
  0x96   : > { %p2858_p0 = scmp.ne.s32.totalorder %s3741_s9, %s2857_s8  ;;  %p2864_p7 = scmp.lt.u32.totalorder %s2857_s8, %s3741_s9 }
  0x98   : > { %p2860_p11 = pnand %p2858_p0, %p3800_p8 }
  0x9a   : > { %p2861_p13 = pneg %p2860_p11 }
  0x9c   : > { %p2866_p10 = pnand %p2864_p7, %p2861_p13 }
  0x9e   : > { %2869 = shalt.err (!%p2866_p10)
}
  0x9f   : > { %s2870_s3 = scalar_lea.vmem %s414_s13, 1024  ;;  %p2878_p6 = scmp.lt.s32.totalorder %s414_s13, %s414_s13 }
  0xa0   : > { %p2871_p9 = scmp.ne.s32.totalorder %s414_s13, %s2870_s3  ;;  %p2879_p3 = scmp.lt.s32.totalorder %s2870_s3, %s2870_s3 }
  0xa2   : > { %p2873_p12 = pnand %p2871_p9, %p3800_p8  ;;  %p2880_p5 = por %p2879_p3, %p2878_p6 }
  0xa4   : > { %p2874_p1 = pneg %p2873_p12 }
  0xa6   : > { %p2881_p2 = pnand %p2880_p5, %p2874_p1 }
  0xa8   : > { %2884 = shalt.err (!%p2881_p2)
}
  0xa9   : > { %2587 = dma.hbm_to_vmem [thread:$0]  (!%p3801_p4), %s3741_s9, 1024, %s414_s13, [#allocation12], %s3799_s17, %s3799_s17, %s3798_s12  }
  0xaa   : > { %s3350_s30 = scalar_lea.hbm %s3732_s0, %s3252_s22  ;;  %s440_s19 = scalar_lea.vmem [#allocation2], %s3249_s21 }
  0xab   : > { %s447_s25 = sshll.u32 %s440_s19, 4  ;;  %s3802_s24 = sand.u32 1, %s3019_s27   ;;  %s3353_s25 = int_to_ptr.vmem [resolvable:$true] %s447_s25 }
  0xac   : > { %s3357_s8 = scalar_lea.sflag [#allocation3], %s3802_s24  ;;  %s2885_s20 = scalar_lea.hbm %s3350_s30, 128 }
  0xad   : > { %p2886_p2 = scmp.ne.s32.totalorder %s3350_s30, %s2885_s20  ;;  %p3803_p8 = scmp.ne.s32.totalorder %s3797_s11, 0 }
  0xae   : > { %s2890_s28 = scalar_lea.hbm %s3732_s0, 256  ;;  %p2891_p11 = scmp.lt.u32.totalorder %s3350_s30, %s3732_s0 }
  0xaf   : > { %p2888_p4 = pnand %p2886_p2, %p3803_p8  ;;  %p2892_p13 = scmp.lt.u32.totalorder %s2890_s28, %s2885_s20 }
  0xb0   : > { %p2894_p10 = scmp.lt.u32.totalorder %s2885_s20, %s3350_s30 }
  0xb1   : > { %p2889_p0 = pneg %p2888_p4  ;;  %p2893_p7 = por %p2892_p13, %p2891_p11 }
  0xb3   : > { %p2895_p9 = por %p2894_p10, %p2893_p7 }
  0xb5   : > { %p2896_p12 = pnand %p2895_p9, %p2889_p0 }
  0xb7   : > { %2899 = shalt.err (!%p2896_p12)
}
  0xb8   : > { %s2900_s1 = scalar_lea.vmem %s3353_s25, 128  ;;  %s3032_s15 = smov [#allocation2]  }
  0xb9   : > { %p2901_p1 = scmp.ne.s32.totalorder %s3353_s25, %s2900_s1  ;;  %s2905_s23 = sshll.u32 %s3032_s15, 4  ;;  %s2906_s23 = int_to_ptr.vmem [resolvable:$false] %s2905_s23 }
  0xba   : > { %s2907_s19 = scalar_lea.vmem %s2906_s23, 256  ;;  %p2908_p5 = scmp.lt.s32.totalorder %s3353_s25, %s2906_s23 }
  0xbb   : > { %p2903_p6 = pnand %p2901_p1, %p3803_p8  ;;  %p2909_p2 = scmp.lt.s32.totalorder %s2907_s19, %s2900_s1 }
  0xbd   : > { %p2904_p3 = pneg %p2903_p6  ;;  %p2910_p4 = por %p2909_p2, %p2908_p5 }
  0xbf   : > { %p2911_p11 = pnand %p2910_p4, %p2904_p3 }
  0xc1   : > { %2914 = shalt.err (!%p2911_p11)
}
  0xc2   : > { %p3804_p0 = scmp.ne.s32.totalorder %s3795_s18, 0  ;;  %s3388_s13 = scalar_lea.hbm %s3734_s2, %s3252_s22 }
  0xc3   : > { %s482_s10 = scalar_lea.vmem [#allocation7], %s3249_s21  ;;  %s2915_s3 = scalar_lea.hbm %s3388_s13, 128 }
  0xc4   : > { %2591 = dma.hbm_to_vmem [thread:$0]  (!%p3804_p0), %s3350_s30, 128, %s3353_s25, %s3357_s8, %s3799_s17, %s3799_s17, %s3798_s12  }
  0xc5   : > { %s489_s28 = sshll.u32 %s482_s10, 4  ;;  %p2916_p13 = scmp.ne.s32.totalorder %s3388_s13, %s2915_s3  ;;  %s3391_s28 = int_to_ptr.vmem [resolvable:$true] %s489_s28 }
  0xc6   : > { %s2920_s25 = scalar_lea.hbm %s3734_s2, 256  ;;  %p2921_p9 = scmp.lt.u32.totalorder %s3388_s13, %s3734_s2 }
  0xc7   : > { %p2918_p7 = pnand %p2916_p13, %p3803_p8  ;;  %p2922_p12 = scmp.lt.u32.totalorder %s2920_s25, %s2915_s3 }
  0xc8   : > { %p2924_p6 = scmp.lt.u32.totalorder %s2915_s3, %s3388_s13 }
  0xc9   : > { %p2919_p10 = pneg %p2918_p7  ;;  %p2923_p1 = por %p2922_p12, %p2921_p9 }
  0xcb   : > { %p2925_p3 = por %p2924_p6, %p2923_p1 }
  0xcd   : > { %p2926_p5 = pnand %p2925_p3, %p2919_p10 }
  0xcf   : > { %2929 = shalt.err (!%p2926_p5)
}
  0xd0   : > { %s2930_s21 = scalar_lea.vmem %s3391_s28, 128  ;;  %s3033_s1 = smov [#allocation7]  }
  0xd1   : > { %p2931_p2 = scmp.ne.s32.totalorder %s3391_s28, %s2930_s21  ;;  %s2935_s15 = sshll.u32 %s3033_s1, 4  ;;  %s2936_s15 = int_to_ptr.vmem [resolvable:$false] %s2935_s15 }
  0xd2   : > { %s2937_s23 = scalar_lea.vmem %s2936_s15, 256  ;;  %p2938_p13 = scmp.lt.s32.totalorder %s3391_s28, %s2936_s15 }
  0xd3   : > { %p2933_p4 = pnand %p2931_p2, %p3803_p8  ;;  %p2939_p7 = scmp.lt.s32.totalorder %s2937_s23, %s2930_s21 }
  0xd5   : > { %p2934_p11 = pneg %p2933_p4  ;;  %p2940_p9 = por %p2939_p7, %p2938_p13 }
  0xd7   : > { %p2941_p12 = pnand %p2940_p9, %p2934_p11 }
  0xd9   : > { %2944 = shalt.err (!%p2941_p12)
}
  0xda   : > { %2597 = dma.hbm_to_vmem [thread:$0]  (!%p3804_p0), %s3388_s13, 128, %s3391_s28, %s3270_s7, %s3799_s17, %s3799_s17, %s3798_s12  }
  0xdb   : > { %p3805_p8 = scmp.ne.s32.totalorder %s3785_s16, 0 }
  0xdc   : > { %s3421_s11 = sand.u32 (!%p3805_p8), 1, %s3015_s26   ;;  %p3806_p10 = scmp.ne.s32.totalorder (!%p3805_p8), %s3782_s14, 0 }
  0xdd   : > { %501 = sbr.rel (%p3805_p8) target bundleno = 3531 (0xdcb), region = 72  ;;  %s3424_s19 = sshll.u32 (!%p3805_p8), %s3421_s11, 3 }
  0xde   : > { %s504_s18 = scalar_lea.sflag (!%p3805_p8), [#allocation3], %s3421_s11  ;;  %s507_s24 = scalar_lea.vmem (!%p3805_p8), [#allocation2], %s3424_s19 }
  0xe4   : > { %2990 = dma.done.wait (%p3806_p10), %s504_s18, 128  }
  0xe5   : > { %2992 = vsyncadd (%p3806_p10), %s504_s18, 4294967168  ;;  %s512_s7 = sand.u32 1, %s3133_s29   ;;  %s516_s12 = scalar_lea.vmem [#allocation5], %s3424_s19 }
  0xe6   : > { %s513_s16 = scalar_lea.sflag [#allocation6], %s512_s7 }
  0xe7   : > { %2994 = dma.done.wait (%p3806_p10), %s513_s16, 256  }
  0xe8   : > { %2996 = vsyncadd (%p3806_p10), %s513_s16, 4294967040  ;;  %s525_s17 = scalar_lea.vmem [#allocation7], %s3424_s19  ;;  %p3807_p0 = scmp.eq.s32.totalorder %s3133_s29, 0 }
  0xea   : > { %2998 = dma.done.wait (%p3807_p0), [#allocation9], 2048   ;;  %p3808_p1 = pmov %p3807_p0 }
  0xeb   : > { %p3809_p6 = pmov %p3807_p0 }
  0xec   : > { %3000 = vsyncadd (%p3808_p1), [#allocation9], 4294965248 }
  0xed   : > { %3002 = dma.done.wait (%p3809_p6), [#allocation12], 2048   ;;  %p3810_p3 = pmov %p3807_p0 }
  0xee   : > { %v3034_v0 = vmov 0.0   ;;  %vm3035_vm0 = vmmov 0   ;;  %v2672_v1 = vld [vmem:[#allocation10] sm:$0xff]   ;;  %v2673_v2 = vld [vmem:[#allocation10 + $0x8] sm:$0xff]   ;;  %v2675_v5 = vld [vmem:[#allocation10 + $0x10] sm:$0xff]   ;;  %s3811_s28 = sld [smem:[#allocation28_spill]] }
  0xef   : > { %3004 = vsyncadd (%p3810_p3), [#allocation12], 4294965248  ;;  %2395 = vmatprep.subr.bf16.mxu1 %v3034_v0  ;;  %2375 = vmatprep.subr.bf16.mxu0 %v3034_v0  ;;  %v2674_v3 = vld [vmem:[#allocation8] sm:$0xff]   ;;  %v2676_v4 = vld [vmem:[#allocation8 + $0x8] sm:$0xff]   ;;  %vm977_vm1 = vcmask 261120   ;;  %vm1070_vm2 = vcmask 64512  }
  0xf0   : > { %2411 = vmatprep.mubr.msk.bf16.mxu1 %vm3035_vm0, %v3034_v0  ;;  %2391 = vmatprep.mubr.msk.bf16.mxu0 %vm3035_vm0, %v3034_v0  ;;  %v2678_v6 = vld [vmem:[#allocation8 + $0x10] sm:$0xff]   ;;  %v2677_v7 = vld [vmem:[#allocation10 + $0x18] sm:$0xff]   ;;  %v2679_v9 = vld [vmem:[#allocation10 + $0x20] sm:$0xff]   ;;  %s3036_s3 = smov 96   ;;  %s3812_s25 = sld [smem:[#allocation30_spill]]  ;;  %vm1098_vm3 = vcmask 1043456  }
  0xf1   : > { %2396 = vmatpush3.bf16.msra.mxu1 %v2672_v1  ;;  %2376 = vmatpush3.bf16.msra.mxu0 %v2674_v3  ;;  %v2680_v8 = vld [vmem:[#allocation8 + $0x18] sm:$0xff]   ;;  %v2682_v10 = vld [vmem:[#allocation8 + $0x20] sm:$0xff]   ;;  %v2681_v11 = vld [vmem:[#allocation10 + $0x28] sm:$0xff]   ;;  %s3037_s8 = smov 64   ;;  %s3038_s22 = smov 32   ;;  %vm1874_vm4 = vcmask 523264  }
  0xf2   : > { %2397 = vmatprep.subr.bf16.mxu1 %v3034_v0  ;;  %2377 = vmatprep.subr.bf16.mxu0 %v3034_v0  ;;  %v2684_v12 = vld [vmem:[#allocation8 + $0x28] sm:$0xff]   ;;  %v2683_v13 = vld [vmem:[#allocation10 + $0x30] sm:$0xff]   ;;  %v2685_v15 = vld [vmem:[#allocation10 + $0x38] sm:$0xff]   ;;  %vm1877_vm5 = vcmask 785408   ;;  %s3813_s15 = sld [smem:[#allocation31_spill]]  ;;  %s3814_s18 = sld [smem:[#allocation32_spill]] }
  0xf3   : > { %v2686_v14 = vld [vmem:[#allocation8 + $0x30] sm:$0xff]   ;;  %v2688_v16 = vld [vmem:[#allocation8 + $0x38] sm:$0xff]   ;;  %v2687_v17 = vld [vmem:[%s516_s12] sm:$0xff]   ;;  %s3815_s12 = sld [smem:[#allocation33_spill]]  ;;  %s2306_s14 = sshll.u32 %s3133_s29, 8 }
  0xf4   : > { %v2689_v18 = vld [vmem:[%s507_s24] sm:$0xff]   ;;  %v2690_v39 = vld [vmem:[#allocation11] sm:$0xff]   ;;  %v2691_v40 = vld [vmem:[#allocation11 + $0x8] sm:$0xff]   ;;  %s2228_s24 = sshll.u32 %s3421_s11, 4  ;;  %s2037_s30 = scalar_lea.sflag [#allocation4], %s3421_s11 }
  0xf5   : > { %2398 = vmatpush3.bf16.msra.mxu1 %v2673_v2  ;;  %2378 = vmatpush3.bf16.msra.mxu0 %v2676_v4  ;;  %v2239_v19 = vld [vmem:[%s3738_s6] ss:$0 sm:$0xff]  ;;  %v2693_v42 = vld [vmem:[#allocation11 + $0x18] sm:$0xff]   ;;  %v2694_v43 = vld [vmem:[#allocation11 + $0x20] sm:$0xff]   ;;  %s593_s20 = scalar_lea.vmem [#allocation14], %s2228_s24  ;;  %s3039_s29 = smov [#allocation14]  }
  0xf6   : > { %2399 = vmatprep.subr.bf16.mxu1 %v3034_v0  ;;  %2379 = vmatprep.subr.bf16.mxu0 %v3034_v0  ;;  %v2229_v24 = vld [vmem:[%s3811_s28] ss:$0 sm:$0xff]  ;;  %v2695_v44 = vld [vmem:[#allocation11 + $0x28] sm:$0xff]   ;;  %v2697_v46 = vld [vmem:[#allocation11 + $0x38] sm:$0xff]   ;;  %s2050_s13 = sshll.u32 %s593_s20, 4  ;;  %s3688_s13 = int_to_ptr.vmem [resolvable:$true] %s2050_s13 }
  0xf7   : > { %v2692_v41 = vld [vmem:[#allocation11 + $0x10] sm:$0xff]  }
  0xf8   : > { %v2696_v45 = vld [vmem:[#allocation11 + $0x30] sm:$0xff]  }
  0xf9   : > { %2400 = vmatpush3.bf16.msra.mxu1 %v2675_v5  ;;  %2380 = vmatpush3.bf16.msra.mxu0 %v2678_v6  ;;  %v2698_v47 = vld [vmem:[%s525_s17] sm:$0xff]   ;;  %s3816_s17 = sld [smem:[#allocation24_spill]] }
  0xfa   : > { %2401 = vmatprep.subr.bf16.mxu1 %v3034_v0  ;;  %2381 = vmatprep.subr.bf16.mxu0 %v3034_v0 }
  0xfd   : > { %2402 = vmatpush3.bf16.msra.mxu1 %v2677_v7  ;;  %2382 = vmatpush3.bf16.msra.mxu0 %v2680_v8  ;;  %v2249_v8 = vld [vmem:[%s3812_s25] ss:$0 sm:$0xff]  ;;  %s2945_s25 = scalar_lea.vmem %s3688_s13, 256 }
  0xfe   : > { %2403 = vmatprep.subr.bf16.mxu1 %v3034_v0  ;;  %2383 = vmatprep.subr.bf16.mxu0 %v3034_v0  ;;  %p2946_p5 = scmp.ne.s32.totalorder %s3688_s13, %s2945_s25 }
  0xff   : > { %p3818_p2 = scmp.ne.s32.totalorder %s3816_s17, 0 }
 0x101   : > { %2404 = vmatpush3.bf16.msra.mxu1 %v2679_v9  ;;  %2384 = vmatpush3.bf16.msra.mxu0 %v2682_v10  ;;  %p2947_p4 = pnand %p2946_p5, %p3818_p2 }
 0x102   : > { %2405 = vmatprep.subr.bf16.mxu1 %v3034_v0  ;;  %2385 = vmatprep.subr.bf16.mxu0 %v3034_v0 }
 0x103   : > { %p2948_p11 = pneg %p2947_p4 }
 0x105   : > { %2406 = vmatpush3.bf16.msra.mxu1 %v2681_v11  ;;  %2386 = vmatpush3.bf16.msra.mxu0 %v2684_v12 }
 0x106   : > { %2407 = vmatprep.subr.bf16.mxu1 %v3034_v0  ;;  %2387 = vmatprep.subr.bf16.mxu0 %v3034_v0 }
 0x109   : > { %2408 = vmatpush3.bf16.msra.mxu1 %v2683_v13  ;;  %2388 = vmatpush3.bf16.msra.mxu0 %v2686_v14 }
 0x10a   : > { %2409 = vmatprep.subr.bf16.mxu1 %v3034_v0  ;;  %2389 = vmatprep.subr.bf16.mxu0 %v3034_v0 }
 0x10d   : > { %2410 = vmatpush3.bf16.msra.mxu1 %v2685_v15  ;;  %2390 = vmatpush3.bf16.msra.mxu0 %v2688_v16 }
 0x10e   : > { %2435 = vmatprep.subr.bf16.mxu1 %v3034_v0  ;;  %2415 = vmatprep.subr.bf16.mxu0 %v3034_v0 }
 0x110   : > { %2412 = vmatmul.mubr.bf16.vlgmr.msra.gmra.mrb[0].mxu1 %v2687_v17  ;;  %2392 = vmatmul.mubr.bf16.vlgmr.msra.gmra.mrb[0].mxu0 %v2689_v18 }
 0x111   : > { %2437 = vmatprep.mubr.msk.bf16.mxu1 %vm3035_vm0, %v3034_v0  ;;  %2431 = vmatprep.mubr.msk.bf16.mxu0 %vm3035_vm0, %v3034_v0 }
 0x112   : > { %2416 = vmatpush3.bf16.msra.mxu0 %v2690_v39 }
 0x113   : > { %2417 = vmatprep.subr.bf16.mxu0 %v3034_v0 }
 0x116   : > { %2418 = vmatpush3.bf16.msra.mxu0 %v2691_v40 }
 0x117   : > { %2419 = vmatprep.subr.bf16.mxu0 %v3034_v0 }
 0x11a   : > { %2420 = vmatpush3.bf16.msra.mxu0 %v2692_v41 }
 0x11b   : > { %2421 = vmatprep.subr.bf16.mxu0 %v3034_v0 }
 0x11e   : > { %2422 = vmatpush3.bf16.msra.mxu0 %v2693_v42 }
 0x11f   : > { %2423 = vmatprep.subr.bf16.mxu0 %v3034_v0 }
 0x122   : > { %2424 = vmatpush3.bf16.msra.mxu0 %v2694_v43 }
 0x123   : > { %2425 = vmatprep.subr.bf16.mxu0 %v3034_v0 }
 0x126   : > { %2426 = vmatpush3.bf16.msra.mxu0 %v2695_v44 }
 0x127   : > { %2427 = vmatprep.subr.bf16.mxu0 %v3034_v0 }
 0x12a   : > { %2428 = vmatpush3.bf16.msra.mxu0 %v2696_v45 }
 0x12b   : > { %2429 = vmatprep.subr.bf16.mxu0 %v3034_v0 }
 0x12e   : > { %2430 = vmatpush3.bf16.msra.mxu0 %v2697_v46 }
 0x12f   : > { %2483 = vmatprep.subr.bf16.mxu0 %v3034_v0 }
 0x131   : > { %2432 = vmatmul.mubr.bf16.vlgmr.msra.gmra.mrb[4].mxu0 %v2698_v47 }
 0x132   : > { %2485 = vmatprep.mubr.msk.bf16.mxu0 %vm3035_vm0, %v3034_v0 }
 0x1e3   : > { %v833_v20 = vpop.f32.mrb[0].mxu1  ;;  %v712_v25 = vpop.f32.mrb[0].mxu0 }
 0x1e4   : > { %v834_v21 = vadd.f32 %v2239_v19, %v833_v20  ;;  %v2413_v22 = vpop.f32.mrb[1].mxu1  ;;  %v2393_v28 = vpop.f32.mrb[1].mxu0  ;;  %v713_v31 = vadd.f32 %v2229_v24, %v712_v25 }
 0x1e5   : > { %v836_v23 = vpop.f32.mrb[2].mxu1  ;;  %v715_v29 = vpop.f32.mrb[2].mxu0 }
 0x1e6   : > { %v3483_v26 = vpack.c.bf16 %v834_v21, %v834_v21  ;;  %v2414_v27 = vpop.f32.mrb[3].mxu1  ;;  %v837_v30 = vadd.f32 %v2239_v19, %v836_v23  ;;  %v2394_v33 = vpop.f32.mrb[3].mxu0  ;;  %v3490_v35 = vpack.c.bf16 %v713_v31, %v713_v31  ;;  %v716_v37 = vadd.f32 %v2229_v24, %v715_v29 }
 0x1e8   : > { %v982_v32 = vsel %vm977_vm1, %v3483_v26, 0  ;;  %v3488_v34 = vpack.c.bf16 %v837_v30, %v837_v30  ;;  %v3499_v38 = vpack.c.bf16 %v716_v37, %v716_v37 }
 0x1e9   : > { %2436 = vmatpush3.bf16.xpose.msra.mxu1 %v982_v32 }
 0x1ea   : > { %2441 = vmatprep.subr.bf16.mxu1 %v3034_v0  ;;  %v1028_v36 = vsel %vm977_vm1, %v3488_v34, 0 }
 0x1f0   : > { %2438 = vmatmul.mubr.msk.bf16.vlgmr.msra.gmra.mrb[4].mxu1 %vm977_vm1, %v3490_v35 }
 0x1f1   : > { %2442 = vmatpush3.bf16.xpose.msra.mxu1 %v1028_v36  ;;  %2443 = vmatprep.mubr.msk.bf16.mxu1 %vm3035_vm0, %v3034_v0 }
 0x1f2   : > { %2447 = vmatprep.subr.bf16.mxu1 %v3034_v0 }
 0x1f8   : > { %2444 = vmatmul.mubr.msk.bf16.vlgmr.msra.gmra.mrb[8].mxu1 %vm977_vm1, %v3499_v38 }
 0x1f9   : > { %2449 = vmatprep.mubr.msk.bf16.mxu1 %vm3035_vm0, %v3034_v0 }
 0x204   : > { %v954_v5 = vpop.f32.mrb[4].mxu0 }
 0x205   : > { %v2433_v6 = vpop.f32.mrb[5].mxu0  ;;  %v955_v10 = vadd.f32 %v2249_v8, %v954_v5 }
 0x206   : > { %v957_v7 = vpop.f32.mrb[6].mxu0 }
 0x207   : > { %v2434_v9 = vpop.f32.mrb[7].mxu0  ;;  %v958_v11 = vadd.f32 %v2249_v8, %v957_v7  ;;  %v3526_v12 = vpack.c.bf16 %v955_v10, %v955_v10 }
 0x209   : > { %v1100_v13 = vsel %vm1098_vm3, %v3526_v12, 0  ;;  %v3537_v18 = vpack.c.bf16 %v958_v11, %v958_v11 }
 0x20a   : > { %2448 = vmatpush3.bf16.msra.mxu1 %v1100_v13 }
 0x20b   : > { %2453 = vmatprep.subr.bf16.mxu1 %v3034_v0  ;;  %v1146_v20 = vsel %vm1098_vm3, %v3537_v18, 0 }
 0x2c3   : > { %v1018_v48 = vpop.f32.mrb[4].mxu1 }
 0x2c4   : > { %v2439_v49 = vpop.f32.mrb[5].mxu1  ;;  %v1071_v50 = vsel %vm1070_vm2, %v1018_v48, -inf }
 0x2c5   : > { %1072 = vmax.xlane.f32.xlu0 %v1071_v50  ;;  %v1021_v51 = vpop.f32.mrb[6].mxu1 }
 0x2c6   : > { %v2440_v52 = vpop.f32.mrb[7].mxu1 }
 0x2cb   : > { %v1064_v53 = vpop.f32.mrb[8].mxu1 }
 0x2cc   : > { %v2445_v54 = vpop.f32.mrb[9].mxu1  ;;  %v1074_v55 = vsel %vm1070_vm2, %v1064_v53, -inf }
 0x2cd   : > { %1075 = vmax.xlane.f32.xlu0 %v1074_v55  ;;  %v1067_v56 = vpop.f32.mrb[10].mxu1 }
 0x2ce   : > { %v2446_v57 = vpop.f32.mrb[11].mxu1 }
 0x2e3   : > { %1190 = vrot.lane.b32.xlu0 %v3483_v26, %s3036_s3 }
 0x352   : > { %v1073_v58 = vpop.xlane.xlu0 %1072 }
 0x353   : > { %v1077_v59 = vsub.f32 %v1018_v48, %v1073_v58 }
 0x355   : > { %v1079_v60 = vmul.f32 1.442695, %v1077_v59 }
 0x357   : > { %2707 = vpow2.f32 %v1079_v60 }
 0x35a   : > { %v1076_v61 = vpop.xlane.xlu0 %1075 }
 0x35b   : > { %v1078_v62 = vsub.f32 %v1064_v53, %v1076_v61 }
 0x35d   : > { %v1081_v63 = vmul.f32 1.442695, %v1078_v62 }
 0x35e   : > { %v1191_v23 = vpop.permute.xlu0 %1190 }
 0x35f   : > { %2709 = vpow2.f32 %v1081_v63  ;;  %v1196_v27 = vsel %vm977_vm1, %v1191_v23, 0 }
 0x361   : > { %v2708_v1 = vpop.eup %2707 }
 0x362   : > { %v1083_v2 = vsel %vm1070_vm2, %v2708_v1, 0.0 }
 0x363   : > { %1084 = vadd.xlane.f32.xlu1 %v1083_v2 }
 0x369   : > { %v2710_v3 = vpop.eup %2709 }
 0x36a   : > { %v1086_v4 = vsel %vm1070_vm2, %v2710_v3, 0.0 }
 0x36b   : > { %1087 = vadd.xlane.f32.xlu1 %v1086_v4 }
 0x37c   : > { %1188 = vrot.lane.b32.xlu1 %v3490_v35, %s3036_s3 }
 0x380   : > { %1240 = vrot.lane.b32.xlu1 %v3488_v34, %s3036_s3 }
 0x384   : > { %1238 = vrot.lane.b32.xlu1 %v3499_v38, %s3036_s3 }
 0x3f0   : > { %v1085_v14 = vpop.xlane.xlu1 %1084 }
 0x3f1   : > { %2711 = vrcp.f32 %v1085_v14 }
 0x3f8   : > { %v1088_v15 = vpop.xlane.xlu1 %1087 }
 0x3f9   : > { %2713 = vrcp.f32 %v1088_v15 }
 0x3fb   : > { %v2712_v16 = vpop.eup %2711 }
 0x3fc   : > { %v1090_v17 = vmul.f32 %v2712_v16, %v2708_v1  ;;  %v1189_v25 = vpop.permute.xlu1 %1188 }
 0x3fe   : > { %v1093_v19 = vpack.c.bf16 %v1090_v17, %v1090_v17 }
 0x400   : > { %2450 = vmatmul.mubr.msk.bf16.vlgmr.msra.gmra.mrb[12].mxu1 %vm1070_vm2, %v1093_v19  ;;  %v1241_v28 = vpop.permute.xlu1 %1240 }
 0x401   : > { %2454 = vmatpush3.bf16.msra.mxu1 %v1146_v20  ;;  %2455 = vmatprep.mubr.msk.bf16.mxu1 %vm3035_vm0, %v3034_v0  ;;  %v1246_v29 = vsel %vm977_vm1, %v1241_v28, 0 }
 0x402   : > { %2459 = vmatprep.subr.bf16.mxu1 %v3034_v0 }
 0x403   : > { %v2714_v21 = vpop.eup %2713 }
 0x404   : > { %v1092_v22 = vmul.f32 %v2714_v21, %v2710_v3  ;;  %v1239_v30 = vpop.permute.xlu1 %1238 }
 0x406   : > { %v1094_v24 = vpack.c.bf16 %v1092_v22, %v1092_v22 }
 0x408   : > { %2456 = vmatmul.mubr.msk.bf16.vlgmr.msra.gmra.mrb[16].mxu1 %vm1070_vm2, %v1094_v24 }
 0x409   : > { %2461 = vmatprep.mubr.msk.bf16.mxu1 %vm3035_vm0, %v3034_v0 }
 0x40a   : > { %2460 = vmatpush3.bf16.xpose.msra.mxu1 %v1196_v27 }
 0x40b   : > { %2465 = vmatprep.subr.bf16.mxu1 %v3034_v0 }
 0x411   : > { %2462 = vmatmul.mubr.msk.bf16.vlgmr.msra.gmra.mrb[20].mxu1 %vm977_vm1, %v1189_v25 }
 0x412   : > { %2466 = vmatpush3.bf16.xpose.msra.mxu1 %v1246_v29  ;;  %2467 = vmatprep.mubr.msk.bf16.mxu1 %vm3035_vm0, %v3034_v0 }
 0x413   : > { %2471 = vmatprep.subr.bf16.mxu1 %v3034_v0 }
 0x419   : > { %2468 = vmatmul.mubr.msk.bf16.vlgmr.msra.gmra.mrb[24].mxu1 %vm977_vm1, %v1239_v30 }
 0x41a   : > { %2473 = vmatprep.mubr.msk.bf16.mxu1 %vm3035_vm0, %v3034_v0 }
 0x4d3   : > { %v3558_v31 = vpop.f32.mrb[12].mxu1 }
 0x4d4   : > { %v2451_v32 = vpop.f32.mrb[13].mxu1 }
 0x4d5   : > { %v1139_v33 = vpop.f32.mrb[14].mxu1 }
 0x4d6   : > { %v2452_v36 = vpop.f32.mrb[15].mxu1 }
 0x4db   : > { %v3560_v37 = vpop.f32.mrb[16].mxu1 }
 0x4dc   : > { %v2457_v39 = vpop.f32.mrb[17].mxu1 }
 0x4dd   : > { %v1185_v40 = vpop.f32.mrb[18].mxu1 }
 0x4de   : > { %v2458_v41 = vpop.f32.mrb[19].mxu1 }
 0x4e4   : > { %v1232_v42 = vpop.f32.mrb[20].mxu1 }
 0x4e5   : > { %v2463_v43 = vpop.f32.mrb[21].mxu1  ;;  %v1288_v44 = vsel %vm1070_vm2, %v1232_v42, -inf }
 0x4e6   : > { %1289 = vmax.xlane.f32.xlu0 %v1288_v44  ;;  %v1235_v45 = vpop.f32.mrb[22].mxu1 }
 0x4e7   : > { %v2464_v46 = vpop.f32.mrb[23].mxu1 }
 0x4ec   : > { %v1282_v47 = vpop.f32.mrb[24].mxu1 }
 0x4ed   : > { %v2469_v48 = vpop.f32.mrb[25].mxu1  ;;  %v1291_v49 = vsel %vm1070_vm2, %v1282_v47, -inf }
 0x4ee   : > { %1292 = vmax.xlane.f32.xlu1 %v1291_v49  ;;  %v1285_v50 = vpop.f32.mrb[26].mxu1 }
 0x4ef   : > { %v2470_v51 = vpop.f32.mrb[27].mxu1 }
 0x4ff   : > { %1360 = vrot.lane.b32.xlu1 %v3537_v18, %s3036_s3 }
 0x503   : > { %1410 = vrot.lane.b32.xlu1 %v3483_v26, %s3037_s8 }
 0x507   : > { %1460 = vrot.lane.b32.xlu1 %v3488_v34, %s3037_s8 }
 0x50b   : > { %1458 = vrot.lane.b32.xlu1 %v3499_v38, %s3037_s8 }
 0x573   : > { %v1290_v52 = vpop.xlane.xlu0 %1289 }
 0x574   : > { %v1294_v53 = vsub.f32 %v1232_v42, %v1290_v52 }
 0x576   : > { %v1296_v54 = vmul.f32 1.442695, %v1294_v53 }
 0x578   : > { %2715 = vpow2.f32 %v1296_v54 }
 0x57b   : > { %v1293_v55 = vpop.xlane.xlu1 %1292 }
 0x57c   : > { %v1295_v56 = vsub.f32 %v1282_v47, %v1293_v55 }
 0x57e   : > { %v1298_v57 = vmul.f32 1.442695, %v1295_v56 }
 0x57f   : > { %v1361_v58 = vpop.permute.xlu1 %1360 }
 0x580   : > { %2717 = vpow2.f32 %v1298_v57  ;;  %v1366_v10 = vsel %vm1098_vm3, %v1361_v58, 0 }
 0x582   : > { %v2716_v59 = vpop.eup %2715 }
 0x583   : > { %v1411_v60 = vpop.permute.xlu1 %1410  ;;  %v1300_v61 = vsel %vm1070_vm2, %v2716_v59, 0.0 }
 0x584   : > { %v1416_v62 = vsel %vm977_vm1, %v1411_v60, 0  ;;  %1301 = vadd.xlane.f32.xlu0 %v1300_v61 }
 0x585   : > { %2484 = vmatpush3.bf16.xpose.msra.mxu0 %v1416_v62 }
 0x586   : > { %2495 = vmatprep.subr.bf16.mxu0 %v3034_v0 }
 0x587   : > { %v1461_v15 = vpop.permute.xlu1 %1460 }
 0x588   : > { %v1466_v16 = vsel %vm977_vm1, %v1461_v15, 0 }
 0x58a   : > { %v2718_v63 = vpop.eup %2717 }
 0x58b   : > { %v1303_v1 = vsel %vm1070_vm2, %v2718_v63, 0.0  ;;  %v1459_v17 = vpop.permute.xlu1 %1458 }
 0x58c   : > { %1304 = vadd.xlane.f32.xlu0 %v1303_v1 }
 0x5a2   : > { %1312 = vrot.lane.b32.xlu0 %v3526_v12, %s3036_s3 }
 0x5a6   : > { %1408 = vrot.lane.b32.xlu0 %v3490_v35, %s3037_s8 }
 0x611   : > { %v1302_v2 = vpop.xlane.xlu0 %1301 }
 0x612   : > { %2719 = vrcp.f32 %v1302_v2 }
 0x619   : > { %v1305_v3 = vpop.xlane.xlu0 %1304 }
 0x61a   : > { %2721 = vrcp.f32 %v1305_v3 }
 0x61c   : > { %v2720_v4 = vpop.eup %2719 }
 0x61d   : > { %v1307_v5 = vmul.f32 %v2720_v4, %v2716_v59  ;;  %v1313_v6 = vpop.permute.xlu0 %1312 }
 0x61e   : > { %v1318_v7 = vsel %vm1098_vm3, %v1313_v6, 0 }
 0x61f   : > { %2472 = vmatpush3.bf16.msra.mxu1 %v1318_v7  ;;  %v1310_v8 = vpack.c.bf16 %v1307_v5, %v1307_v5 }
 0x620   : > { %2477 = vmatprep.subr.bf16.mxu1 %v3034_v0 }
 0x621   : > { %v1409_v9 = vpop.permute.xlu0 %1408 }
 0x622   : > { %2474 = vmatmul.mubr.msk.bf16.vlgmr.msra.gmra.mrb[28].mxu1 %vm1070_vm2, %v1310_v8  ;;  %2486 = vmatmul.mubr.msk.bf16.vlgmr.msra.gmra.mrb[8].mxu0 %vm977_vm1, %v1409_v9 }
 0x623   : > { %2478 = vmatpush3.bf16.msra.mxu1 %v1366_v10  ;;  %2479 = vmatprep.mubr.msk.bf16.mxu1 %vm3035_vm0, %v3034_v0 }
 0x624   : > { %v2722_v11 = vpop.eup %2721  ;;  %2489 = vmatprep.subr.bf16.mxu1 %v3034_v0  ;;  %2497 = vmatprep.mubr.msk.bf16.mxu0 %vm3035_vm0, %v3034_v0 }
 0x625   : > { %v1309_v13 = vmul.f32 %v2722_v11, %v2718_v63 }
 0x627   : > { %v1311_v14 = vpack.c.bf16 %v1309_v13, %v1309_v13 }
 0x62a   : > { %2480 = vmatmul.mubr.msk.bf16.vlgmr.msra.gmra.mrb[32].mxu1 %vm1070_vm2, %v1311_v14 }
 0x62b   : > { %2491 = vmatprep.mubr.msk.bf16.mxu1 %vm3035_vm0, %v3034_v0 }
 0x62c   : > { %2490 = vmatpush3.bf16.xpose.msra.mxu1 %v1466_v16 }
 0x62d   : > { %2501 = vmatprep.subr.bf16.mxu1 %v3034_v0 }
 0x633   : > { %2492 = vmatmul.mubr.msk.bf16.vlgmr.msra.gmra.mrb[36].mxu1 %vm977_vm1, %v1459_v17 }
 0x634   : > { %2503 = vmatprep.mubr.msk.bf16.mxu1 %vm3035_vm0, %v3034_v0 }
 0x6f5   : > { %v3598_v19 = vpop.f32.mrb[28].mxu1  ;;  %v1452_v20 = vpop.f32.mrb[8].mxu0 }
 0x6f6   : > { %v2475_v21 = vpop.f32.mrb[29].mxu1  ;;  %v2487_v22 = vpop.f32.mrb[9].mxu0  ;;  %v1508_v23 = vsel %vm1070_vm2, %v1452_v20, -inf }
 0x6f7   : > { %v1357_v24 = vpop.f32.mrb[30].mxu1  ;;  %1509 = vmax.xlane.f32.xlu0 %v1508_v23  ;;  %v1455_v25 = vpop.f32.mrb[10].mxu0 }
 0x6f8   : > { %v2476_v27 = vpop.f32.mrb[31].mxu1  ;;  %v2488_v28 = vpop.f32.mrb[11].mxu0 }
 0x6fd   : > { %v3601_v29 = vpop.f32.mrb[32].mxu1 }
 0x6fe   : > { %v2657_v30 = vpack.i.bf16 %v3601_v29, %v3598_v19  ;;  %v2481_v32 = vpop.f32.mrb[33].mxu1 }
 0x6ff   : > { %v1405_v33 = vpop.f32.mrb[34].mxu1 }
 0x700   : > { %v2482_v36 = vpop.f32.mrb[35].mxu1 }
 0x706   : > { %v1502_v39 = vpop.f32.mrb[36].mxu1 }
 0x707   : > { %v2493_v40 = vpop.f32.mrb[37].mxu1  ;;  %v1511_v41 = vsel %vm1070_vm2, %v1502_v39, -inf }
 0x708   : > { %1512 = vmax.xlane.f32.xlu1 %v1511_v41  ;;  %v1505_v42 = vpop.f32.mrb[38].mxu1 }
 0x709   : > { %v2494_v43 = vpop.f32.mrb[39].mxu1 }
 0x719   : > { %1580 = vrot.lane.b32.xlu1 %v3537_v18, %s3037_s8 }
 0x71d   : > { %1630 = vrot.lane.b32.xlu1 %v3483_v26, %s3038_s22 }
 0x721   : > { %1680 = vrot.lane.b32.xlu1 %v3488_v34, %s3038_s22 }
 0x725   : > { %1678 = vrot.lane.b32.xlu1 %v3499_v38, %s3038_s22 }
 0x784   : > { %v1510_v44 = vpop.xlane.xlu0 %1509 }
 0x785   : > { %v1514_v45 = vsub.f32 %v1452_v20, %v1510_v44 }
 0x787   : > { %v1516_v46 = vmul.f32 1.442695, %v1514_v45 }
 0x789   : > { %2723 = vpow2.f32 %v1516_v46 }
 0x793   : > { %v2724_v47 = vpop.eup %2723 }
 0x794   : > { %v1520_v48 = vsel %vm1070_vm2, %v2724_v47, 0.0 }
 0x795   : > { %v1513_v49 = vpop.xlane.xlu1 %1512  ;;  %1521 = vadd.xlane.f32.xlu0 %v1520_v48 }
 0x796   : > { %v1515_v50 = vsub.f32 %v1502_v39, %v1513_v49 }
 0x798   : > { %v1518_v51 = vmul.f32 1.442695, %v1515_v50 }
 0x799   : > { %v1581_v52 = vpop.permute.xlu1 %1580 }
 0x79a   : > { %2725 = vpow2.f32 %v1518_v51  ;;  %v1586_v26 = vsel %vm1098_vm3, %v1581_v52, 0  ;;  %v2699_v52 = vld [vmem:[#allocation13] sm:$0xff]  }
 0x79b   : > { %2502 = vmatpush3.bf16.msra.mxu1 %v1586_v26  ;;  %v2700_v26 = vld [vmem:[#allocation13 + $0x8] sm:$0xff]  }
 0x79c   : > { %2513 = vmatprep.subr.bf16.mxu1 %v3034_v0 }
 0x79d   : > { %v1631_v59 = vpop.permute.xlu1 %1630 }
 0x79e   : > { %v1636_v63 = vsel %vm977_vm1, %v1631_v59, 0 }
 0x7a1   : > { %v1681_v62 = vpop.permute.xlu1 %1680 }
 0x7a2   : > { %v1686_v2 = vsel %vm977_vm1, %v1681_v62, 0 }
 0x7a4   : > { %v2726_v34 = vpop.eup %2725 }
 0x7a5   : > { %v1523_v38 = vsel %vm1070_vm2, %v2726_v34, 0.0  ;;  %v1679_v4 = vpop.permute.xlu1 %1678 }
 0x7a6   : > { %1524 = vadd.xlane.f32.xlu0 %v1523_v38  ;;  %v2702_v38 = vld [vmem:[#allocation13 + $0x18] sm:$0xff]  }
 0x7bc   : > { %1532 = vrot.lane.b32.xlu0 %v3526_v12, %s3037_s8 }
 0x7c0   : > { %1628 = vrot.lane.b32.xlu0 %v3490_v35, %s3038_s22 }
 0x822   : > { %v1522_v53 = vpop.xlane.xlu0 %1521 }
 0x823   : > { %2727 = vrcp.f32 %v1522_v53  ;;  %v2703_v53 = vld [vmem:[#allocation13 + $0x20] sm:$0xff]  }
 0x82d   : > { %v2728_v54 = vpop.eup %2727 }
 0x82e   : > { %v1527_v56 = vmul.f32 %v2728_v54, %v2724_v47  ;;  %v2704_v54 = vld [vmem:[#allocation13 + $0x28] sm:$0xff]  }
 0x830   : > { %v1530_v60 = vpack.c.bf16 %v1527_v56, %v1527_v56  ;;  %v2706_v56 = vld [vmem:[#allocation13 + $0x38] sm:$0xff]  }
 0x833   : > { %v1525_v55 = vpop.xlane.xlu0 %1524 }
 0x834   : > { %2729 = vrcp.f32 %v1525_v55  ;;  %v2705_v55 = vld [vmem:[#allocation13 + $0x30] sm:$0xff]  }
 0x837   : > { %v1533_v57 = vpop.permute.xlu0 %1532 }
 0x838   : > { %v1538_v58 = vsel %vm1098_vm3, %v1533_v57, 0 }
 0x839   : > { %2496 = vmatpush3.bf16.msra.mxu0 %v1538_v58 }
 0x83a   : > { %2507 = vmatprep.subr.bf16.mxu0 %v3034_v0 }
 0x83b   : > { %v1629_v3 = vpop.permute.xlu0 %1628 }
 0x83c   : > { %2498 = vmatmul.mubr.msk.bf16.vlgmr.msra.gmra.mrb[12].mxu0 %vm1070_vm2, %v1530_v60 }
 0x83d   : > { %2509 = vmatprep.mubr.msk.bf16.mxu0 %vm3035_vm0, %v3034_v0 }
 0x83e   : > { %v2730_v35 = vpop.eup %2729 }
 0x83f   : > { %v1529_v61 = vmul.f32 %v2730_v35, %v2726_v34  ;;  %v2701_v34 = vld [vmem:[#allocation13 + $0x10] sm:$0xff]  }
 0x841   : > { %v1531_v1 = vpack.c.bf16 %v1529_v61, %v1529_v61 }
 0x842   : > { %2508 = vmatpush3.bf16.xpose.msra.mxu0 %v1636_v63 }
 0x843   : > { %2504 = vmatmul.mubr.msk.bf16.vlgmr.msra.gmra.mrb[40].mxu1 %vm1070_vm2, %v1531_v1  ;;  %2519 = vmatprep.subr.bf16.mxu0 %v3034_v0 }
 0x844   : > { %2514 = vmatpush3.bf16.xpose.msra.mxu1 %v1686_v2  ;;  %2515 = vmatprep.mubr.msk.bf16.mxu1 %vm3035_vm0, %v3034_v0 }
 0x845   : > { %2525 = vmatprep.subr.bf16.mxu1 %v3034_v0 }
 0x849   : > { %2510 = vmatmul.mubr.msk.bf16.vlgmr.msra.gmra.mrb[16].mxu0 %vm977_vm1, %v1629_v3 }
 0x84a   : > { %2521 = vmatprep.mubr.msk.bf16.mxu0 %vm3035_vm0, %v3034_v0 }
 0x84b   : > { %2516 = vmatmul.mubr.msk.bf16.vlgmr.msra.gmra.mrb[44].mxu1 %vm977_vm1, %v1679_v4 }
 0x84c   : > { %2527 = vmatprep.mubr.msk.bf16.mxu1 %vm3035_vm0, %v3034_v0 }
 0x90f   : > { %v1574_v5 = vpop.f32.mrb[12].mxu0 }
 0x910   : > { %v2499_v6 = vpop.f32.mrb[13].mxu0 }
 0x911   : > { %v1577_v7 = vpop.f32.mrb[14].mxu0 }
 0x912   : > { %v2500_v8 = vpop.f32.mrb[15].mxu0 }
 0x916   : > { %v1622_v9 = vpop.f32.mrb[40].mxu1 }
 0x917   : > { %v2662_v10 = vpack.i.bf16 %v1622_v9, %v1574_v5  ;;  %v2505_v11 = vpop.f32.mrb[41].mxu1 }
 0x918   : > { %v1625_v13 = vpop.f32.mrb[42].mxu1 }
 0x919   : > { %v2506_v14 = vpop.f32.mrb[43].mxu1 }
 0x91c   : > { %v1672_v15 = vpop.f32.mrb[16].mxu0 }
 0x91d   : > { %v2511_v16 = vpop.f32.mrb[17].mxu0  ;;  %v1728_v17 = vsel %vm1070_vm2, %v1672_v15, -inf }
 0x91e   : > { %v1722_v20 = vpop.f32.mrb[44].mxu1  ;;  %1729 = vmax.xlane.f32.xlu0 %v1728_v17  ;;  %v1675_v21 = vpop.f32.mrb[18].mxu0 }
 0x91f   : > { %v2512_v22 = vpop.f32.mrb[19].mxu0  ;;  %v2517_v23 = vpop.f32.mrb[45].mxu1  ;;  %v1731_v24 = vsel %vm1070_vm2, %v1722_v20, -inf }
 0x920   : > { %1732 = vmax.xlane.f32.xlu1 %v1731_v24  ;;  %v1725_v25 = vpop.f32.mrb[46].mxu1 }
 0x921   : > { %v2518_v27 = vpop.f32.mrb[47].mxu1 }
 0x931   : > { %1800 = vrot.lane.b32.xlu1 %v3537_v18, %s3038_s22 }
 0x935   : > { %2658 = vrot.lane.b32.xlu1 %v2657_v30, %s3038_s22 }
 0x939   : > { %2663 = vrot.lane.b32.xlu1 %v2662_v10, %s3037_s8  ;;  %s2949_s8 = sshll.u32 %s3039_s29, 4  ;;  %s2950_s8 = int_to_ptr.vmem [resolvable:$false] %s2949_s8 }
 0x93a   : > { %p2952_p13 = scmp.lt.s32.totalorder %s3688_s13, %s2950_s8 }
 0x9ab   : > { %v1730_v28 = vpop.xlane.xlu0 %1729 }
 0x9ac   : > { %v1734_v32 = vsub.f32 %v1672_v15, %v1730_v28 }
 0x9ad   : > { %v1733_v33 = vpop.xlane.xlu1 %1732 }
 0x9ae   : > { %v1736_v36 = vmul.f32 1.442695, %v1734_v32  ;;  %v1735_v39 = vsub.f32 %v1722_v20, %v1733_v33  ;;  %v2281_v20 = vld [vmem:[%s3813_s15] ss:$0 sm:$0xff] }
 0x9b0   : > { %2731 = vpow2.f32 %v1736_v36  ;;  %v1738_v40 = vmul.f32 1.442695, %v1735_v39 }
 0x9b1   : > { %v1801_v41 = vpop.permute.xlu1 %1800 }
 0x9b2   : > { %2733 = vpow2.f32 %v1738_v40  ;;  %v1806_v42 = vsel %vm1098_vm3, %v1801_v41, 0 }
 0x9b3   : > { %2526 = vmatpush3.bf16.msra.mxu1 %v1806_v42 }
 0x9b5   : > { %v2659_v2 = vpop.permute.xlu1 %2658 }
 0x9b6   : > { %v2661_v4 = vunpack.i.h.bf16 %v2659_v2  ;;  %v2660_v5 = vunpack.i.l.bf16 %v2659_v2 }
 0x9b8   : > { %v1873_v8 = vsel %vm977_vm1, %v3560_v37, %v2661_v4  ;;  %v1872_v9 = vsel %vm977_vm1, %v3558_v31, %v2660_v5 }
 0x9b9   : > { %v2664_v3 = vpop.permute.xlu1 %2663 }
 0x9ba   : > { %v2732_v18 = vpop.eup %2731  ;;  %v2666_v6 = vunpack.i.h.bf16 %v2664_v3  ;;  %v2665_v7 = vunpack.i.l.bf16 %v2664_v3 }
 0x9bb   : > { %v1740_v43 = vsel %vm1070_vm2, %v2732_v18, 0.0 }
 0x9bc   : > { %v2734_v44 = vpop.eup %2733  ;;  %1741 = vadd.xlane.f32.xlu0 %v1740_v43  ;;  %v1876_v13 = vsel %vm1874_vm4, %v1873_v8, %v2666_v6  ;;  %v1875_v14 = vsel %vm1874_vm4, %v1872_v9, %v2665_v7 }
 0x9bd   : > { %v1743_v19 = vsel %vm1070_vm2, %v2734_v44, 0.0 }
 0x9c0   : > { %1744 = vadd.xlane.f32.xlu0 %v1743_v19 }
 0x9d6   : > { %1752 = vrot.lane.b32.xlu0 %v3526_v12, %s3038_s22  ;;  %s2951_s22 = scalar_lea.vmem %s2950_s8, 512 }
 0x9d7   : > { %p2953_p7 = scmp.lt.s32.totalorder %s2951_s22, %s2945_s25 }
 0x9d9   : > { %p2954_p9 = por %p2953_p7, %p2952_p13 }
 0x9db   : > { %p2955_p12 = pnand %p2954_p9, %p2948_p11 }
 0xa49   : > { %v1742_v29 = vpop.xlane.xlu0 %1741 }
 0xa4a   : > { %2735 = vrcp.f32 %v1742_v29 }
 0xa4d   : > { %v1745_v30 = vpop.xlane.xlu0 %1744 }
 0xa4e   : > { %2737 = vrcp.f32 %v1745_v30  ;;  %v2290_v30 = vld [vmem:[%s3814_s18] ss:$0 sm:$0xff] }
 0xa51   : > { %v1753_v45 = vpop.permute.xlu0 %1752 }
 0xa52   : > { %v1758_v46 = vsel %vm1098_vm3, %v1753_v45, 0 }
 0xa53   : > { %2520 = vmatpush3.bf16.msra.mxu0 %v1758_v46  ;;  %v2291_v46 = vld [vmem:[%s3815_s12] ss:$0 sm:$0xff] }
 0xa54   : > { %v2736_v47 = vpop.eup %2735  ;;  %2531 = vmatprep.subr.bf16.mxu0 %v3034_v0 }
 0xa55   : > { %v1747_v48 = vmul.f32 %v2736_v47, %v2732_v18 }
 0xa57   : > { %v1750_v49 = vpack.c.bf16 %v1747_v48, %v1747_v48 }
 0xa58   : > { %v2738_v50 = vpop.eup %2737 }
 0xa59   : > { %v1749_v51 = vmul.f32 %v2738_v50, %v2734_v44  ;;  %2522 = vmatmul.mubr.msk.bf16.vlgmr.msra.gmra.mrb[20].mxu0 %vm1070_vm2, %v1750_v49 }
 0xa5a   : > { %2547 = vmatprep.mubr.msk.bf16.mxu0 %vm3035_vm0, %v3034_v0  ;;  %2532 = vmatpush3.bf16.msra.mxu0 %v2699_v52 }
 0xa5b   : > { %v1751_v12 = vpack.c.bf16 %v1749_v51, %v1749_v51  ;;  %2533 = vmatprep.subr.bf16.mxu0 %v3034_v0 }
 0xa5d   : > { %2528 = vmatmul.mubr.msk.bf16.vlgmr.msra.gmra.mrb[48].mxu1 %vm1070_vm2, %v1751_v12 }
 0xa5e   : > { %2534 = vmatpush3.bf16.msra.mxu0 %v2700_v26 }
 0xa5f   : > { %2535 = vmatprep.subr.bf16.mxu0 %v3034_v0 }
 0xa62   : > { %2536 = vmatpush3.bf16.msra.mxu0 %v2701_v34 }
 0xa63   : > { %2537 = vmatprep.subr.bf16.mxu0 %v3034_v0 }
 0xa66   : > { %2538 = vmatpush3.bf16.msra.mxu0 %v2702_v38 }
 0xa67   : > { %2539 = vmatprep.subr.bf16.mxu0 %v3034_v0 }
 0xa6a   : > { %2540 = vmatpush3.bf16.msra.mxu0 %v2703_v53 }
 0xa6b   : > { %2541 = vmatprep.subr.bf16.mxu0 %v3034_v0 }
 0xa6e   : > { %2542 = vmatpush3.bf16.msra.mxu0 %v2704_v54 }
 0xa6f   : > { %2543 = vmatprep.subr.bf16.mxu0 %v3034_v0 }
 0xa72   : > { %2544 = vmatpush3.bf16.msra.mxu0 %v2705_v55 }
 0xa73   : > { %2545 = vmatprep.subr.bf16.mxu0 %v3034_v0 }
 0xa76   : > { %2546 = vmatpush3.bf16.msra.mxu0 %v2706_v56 }
 0xb2c   : > { %v1794_v57 = vpop.f32.mrb[20].mxu0 }
 0xb2d   : > { %v2523_v58 = vpop.f32.mrb[21].mxu0 }
 0xb2e   : > { %v1797_v59 = vpop.f32.mrb[22].mxu0 }
 0xb2f   : > { %v2524_v60 = vpop.f32.mrb[23].mxu0 }
 0xb30   : > { %v1842_v35 = vpop.f32.mrb[48].mxu1 }
 0xb31   : > { %v2667_v61 = vpack.i.bf16 %v1842_v35, %v1794_v57  ;;  %v2529_v62 = vpop.f32.mrb[49].mxu1 }
 0xb32   : > { %v1845_v63 = vpop.f32.mrb[50].mxu1 }
 0xb33   : > { %v2530_v1 = vpop.f32.mrb[51].mxu1  ;;  %2668 = vrot.lane.b32.xlu0 %v2667_v61, %s3036_s3  ;;  %s3817_s3 = sld [smem:[#allocation34_spill]] }
 0xb39   : > { %s3686_s4 = scalar_lea.hbm %s3817_s3, %s2306_s14 }
 0xba5   : > { %v2669_v0 = vpop.permute.xlu0 %2668 }
 0xba6   : > { %v2671_v10 = vunpack.i.h.bf16 %v2669_v0  ;;  %v2670_v11 = vunpack.i.l.bf16 %v2669_v0 }
 0xba8   : > { %v1879_v15 = vsel %vm1877_vm5, %v1876_v13, %v2671_v10  ;;  %v1878_v16 = vsel %vm1877_vm5, %v1875_v14, %v2670_v11 }
 0xba9   : > { %v1880_v17 = vpack.c.bf16 %v1879_v15, %v1878_v16 }
 0xbab   : > { %2548 = vmatmul.mubr.bf16.vlgmr.msra.gmra.mrb[24].mxu0 %v1880_v17 }
 0xc7e   : > { %v1986_v21 = vpop.f32.mrb[24].mxu0 }
 0xc7f   : > { %v1987_v22 = vadd.f32 %v2281_v20, %v1986_v21  ;;  %v2549_v23 = vpop.f32.mrb[25].mxu0 }
 0xc80   : > { %v1989_v24 = vpop.f32.mrb[26].mxu0 }
 0xc81   : > { %v1990_v37 = vadd.f32 %v2281_v20, %v1989_v24  ;;  %1993 = vadd.xlane.f32.xlu1 %v1987_v22  ;;  %v2550_v25 = vpop.f32.mrb[27].mxu0 }
 0xc83   : > { %1995 = vadd.xlane.f32.xlu0 %v1990_v37 }
 0xd0e   : > { %v1994_v31 = vpop.xlane.xlu1 %1993 }
 0xd0f   : > { %v1998_v27 = vmul.f32 0.0078125, %v1994_v31 }
 0xd10   : > { %v1996_v28 = vpop.xlane.xlu0 %1995 }
 0xd11   : > { %v2000_v32 = vsub.f32 %v1987_v22, %v1998_v27  ;;  %v1999_v33 = vmul.f32 0.0078125, %v1996_v28 }
 0xd13   : > { %v2001_v36 = vsub.f32 %v1990_v37, %v1999_v33  ;;  %v2002_v39 = vmul.f32 %v2000_v32, %v2000_v32 }
 0xd15   : > { %2004 = vadd.xlane.f32.xlu0 %v2002_v39  ;;  %v2003_v40 = vmul.f32 %v2001_v36, %v2001_v36 }
 0xd19   : > { %2006 = vadd.xlane.f32.xlu0 %v2003_v40 }
 0xda2   : > { %v2005_v41 = vpop.xlane.xlu0 %2004 }
 0xda3   : > { %v2008_v42 = vmul.f32 0.0078125, %v2005_v41 }
 0xda5   : > { %v2010_v18 = vadd.f32 1e-05, %v2008_v42 }
 0xda6   : > { %v2007_v43 = vpop.xlane.xlu0 %2006 }
 0xda7   : > { %2739 = vrsqrt.f32 %v2010_v18  ;;  %v2009_v44 = vmul.f32 0.0078125, %v2007_v43 }
 0xda9   : > { %v2011_v19 = vadd.f32 1e-05, %v2009_v44 }
 0xdab   : > { %2741 = vrsqrt.f32 %v2011_v19 }
 0xdb1   : > { %v2740_v29 = vpop.eup %2739 }
 0xdb2   : > { %v2014_v45 = vmul.f32 %v2740_v29, %v2000_v32 }
 0xdb4   : > { %v2023_v47 = vmul.f32 %v2290_v30, %v2014_v45 }
 0xdb5   : > { %v2742_v48 = vpop.eup %2741 }
 0xdb6   : > { %v2032_v49 = vadd.f32 %v2291_v46, %v2023_v47  ;;  %v2015_v50 = vmul.f32 %v2742_v48, %v2001_v36 }
 0xdb8   : > { %v2024_v51 = vmul.f32 %v2290_v30, %v2015_v50  ;;  %2034 = vst [vmem:[%s593_s20] sm:$0xff] %v2032_v49 }
 0xdba   : > { %v2033_v12 = vadd.f32 %v2291_v46, %v2024_v51 }
 0xdbc   : > { %2035 = vst [vmem:[%s593_s20 + $0x8] sm:$0xff] %v2033_v12 }
 0xdbd   : > { %2958 = shalt.err (!%p2955_p12)
}
 0xdbe   : > { %s2959_s21 = scalar_lea.hbm %s3686_s4, 256  ;;  %s2963_s23 = scalar_lea.hbm %s3817_s3, 512 }
 0xdbf   : > { %p2960_p8 = scmp.ne.s32.totalorder %s3686_s4, %s2959_s21  ;;  %p2964_p1 = scmp.lt.u32.totalorder %s3686_s4, %s3817_s3 }
 0xdc0   : > { %p2965_p6 = scmp.lt.u32.totalorder %s2963_s23, %s2959_s21  ;;  %p2967_p5 = scmp.lt.u32.totalorder %s2959_s21, %s3686_s4 }
 0xdc1   : > { %p2961_p10 = pnand %p2960_p8, %p3818_p2 }
 0xdc2   : > { %p2966_p3 = por %p2965_p6, %p2964_p1 }
 0xdc3   : > { %p2962_p0 = pneg %p2961_p10 }
 0xdc4   : > { %p2968_p4 = por %p2967_p5, %p2966_p3 }
 0xdc6   : > { %p2969_p11 = pnand %p2968_p4, %p2962_p0 }
 0xdc8   : > { %2972 = shalt.err (!%p2969_p11)
}
 0xdc9   : > { %s3040_s24 = smov 128   ;;  %s3041_s7 = smov 8  }
 0xdca   : > { %2573 = dma.vmem_to_hbm [thread:$0]  (%p3818_p2), %s3688_s13, 256, %s3686_s4, %s2037_s30, %s3040_s24, %s3040_s24, %s3041_s7  }
 0xdcb PF: > { %s3819_s16 = sld [smem:[#allocation20_spill]]  ;;  %s3820_s12 = sld [smem:[#allocation22_spill]] }
 0xdcc   : > { %s3821_s14 = sld [smem:[#allocation21_spill]] }
 0xdd1   : > { %s2065_s20 = sand.u32 1, %s3819_s16   ;;  %p3822_p13 = scmp.ne.s32.totalorder %s3820_s12, 0 }
 0xdd2   : > { %p3823_p7 = scmp.ge.s32.totalorder %s3821_s14, 2  ;;  %s2066_s10 = scalar_lea.sflag [#allocation4], %s2065_s20 }
 0xdd4   : > { %p2599_p9 = pnand %p3823_p7, %p3822_p13 }
 0xdd6   : > { %3006 = dma.done.wait (!%p2599_p9), %s2066_s10, 256  }
 0xdd7   : > { %3008 = vsyncadd (!%p2599_p9), %s2066_s10, 4294967040  ;;  %s3824_s28 = sld [smem:[#allocation23_spill]]  ;;  %s3825_s29 = sld [smem:[#allocation25_spill]] }
 0xdd8   : > { %s3826_s25 = smov %s3015_s26  ;;  %s3827_s26 = smov %s3019_s27 }
 0xddd   : > { %p31_p12 = scmp.ge.s32.totalorder %s3824_s28, 4   ;;  %s3828_s27 = smov %s3825_s29 }
 0xddf   :  { %33 = sbr.rel (!%p31_p12) target bundleno = 19 (0x13), region = 157 }
 0xde6   :  { %2071 = vsyncpa [#allocation3], 1 }
 0xde7   :  { %2073 = vsyncpa [#allocation3 + $0x1], 1 }
 0xde8   :  { %2074 = vsyncpa [#allocation6], 1 }
 0xde9   :  { %2076 = vsyncpa [#allocation6 + $0x1], 1 }
 0xdea   :  { %2077 = vsyncpa [#allocation9], 1 }
 0xdeb   :  { %2078 = vsyncpa [#allocation12], 1 }
 0xdec   :  { %2079 = vsyncpa [#allocation4], 1 }
 0xded   :  { %2081 = vsyncpa [#allocation4 + $0x1], 1 }

</bundles_post_ra>
